<compile_context>
chip_gen: v7x
topology: tpu7x:2x2x1
jax: 0.10.0
libtpu: 0.0.40
codegen_flags: <defaults>
</compile_context>

<pallas_src>
import functools

import jax
import jax.numpy as jnp
from jax import lax
from jax.experimental import pallas as pl
from jax.experimental.pallas import tpu as pltpu

NEG_BIG = 1.0e12


# ---------------------------------------------------------------------------
# Fused Pallas kernel: all 3 GlobalPointer heads, one (batch, query-tile) step.
# ---------------------------------------------------------------------------
def _fused_gp_kernel(xk_ref, xq_ref, wq_ref, wk_ref, bq_ref, bk_ref,
                     cosk_ref, sink_ref, cosq_ref, sinq_ref, rot_ref,
                     mmul_ref, madd_ref, tril_ref,
                     men_ref, soh_ref, sot_ref,
                     k_scr,
                     *, inner_dim, head_sizes, head_tril):
    D = inner_dim
    E = sum(head_sizes)
    tq = cosq_ref.shape[0]
    L = cosk_ref.shape[0]
    rot = rot_ref[...]                              # [D, D] signed pair-swap matrix

    # ---- keys: project + RoPE once per batch, cache in bf16 VMEM scratch -----
    @pl.when(pl.program_id(1) == 0)
    def _compute_keys():
        k_all = jnp.dot(xk_ref[0], wk_ref[...],
                        preferred_element_type=jnp.float32) + bk_ref[...]   # [L, E*D]
        cos_k = cosk_ref[...]                       # [L, D]
        sin_k = sink_ref[...]
        pieces = []
        for e in range(E):
            ke = k_all[:, e * D:(e + 1) * D]
            ke = ke * cos_k + jnp.dot(ke, rot,
                                      preferred_element_type=jnp.float32) * sin_k
            pieces.append(ke)
        k_scr[...] = jnp.concatenate(pieces, axis=-1).astype(k_scr.dtype)   # one store

    # ---- queries: project + RoPE per (batch, query tile) ---------------------
    q_all = jnp.dot(xq_ref[0], wq_ref[...],
                    preferred_element_type=jnp.float32) + bq_ref[...]       # [tq, E*D]
    cos_q = cosq_ref[...]                           # [tq, D]
    sin_q = sinq_ref[...]

    # Hoisted mask broadcasts (outside the per-ent loop).
    mul_b = jnp.broadcast_to(mmul_ref[0], (tq, L))          # pad multiplier (0/1)
    add_plain = jnp.broadcast_to(madd_ref[0], (tq, L))      # -(1-pad)*1e12/sqrt(D)
    add_tril = add_plain + tril_ref[...]                     # + strict-lower tril mask

    out_refs = (men_ref, soh_ref, sot_ref)
    e = 0
    for o_ref, n_types, use_tril in zip(out_refs, head_sizes, head_tril):
        add_mask = add_tril if use_tril else add_plain
        for le in range(n_types):
            qe = q_all[:, e * D:(e + 1) * D]        # [tq, D]
            qe = qe * cos_q + jnp.dot(qe, rot,
                                      preferred_element_type=jnp.float32) * sin_q
            ke = k_scr[:, e * D:(e + 1) * D]        # [L, D] bf16, already RoPE'd
            # scores: einsum('md,nd->mn') on the MXU in bf16, f32 accumulation.
            s = lax.dot_general(qe.astype(jnp.bfloat16), ke,
                                (((1,), (1,)), ((), ())),
                                preferred_element_type=jnp.float32)         # [tq, L]
            o_ref[0, le] = (s * mul_b + add_mask).astype(o_ref.dtype)
            e += 1


def _pick_query_tile(L, max_tq=256):
    """Largest query tile <= max_tq that divides L (keeps v7x VMEM bounded)."""
    if L <= max_tq:
        return L
    tq = (max_tq // 8) * 8
    while tq >= 8:
        if L % tq == 0:
            return tq
        tq -= 8
    return L


def erenet_heads(x, mask, wq_fused, bq_fused, wk_fused, bk_fused,
                 cos, sin, rot, head_sizes, head_tril,
                 *, query_tile=None, out_dtype=jnp.float32):
    """x: [B,L,H] f32; mask: [B,L]; fused Wq/Wk: [H, E_total*D]; bq/bk: [1, E_total*D]."""
    B, L, H = x.shape
    D = cos.shape[1]
    E = sum(head_sizes)
    tq = query_tile if query_tile is not None else _pick_query_tile(L)
    assert L % tq == 0
    nqt = L // tq
    inv_sqrt_d = 1.0 / (D ** 0.5)

    # bf16 MXU operands (halves DMA bytes for x and weights, full-rate MXU).
    x_bf = x.astype(jnp.bfloat16)
    wq_bf = wq_fused.astype(jnp.bfloat16)
    wk_bf = wk_fused.astype(jnp.bfloat16)

    # Pad masks, pre-scaled by 1/sqrt(D) so no final divide pass is needed.
    mask_f = mask.astype(jnp.float32)
    mask_mul = mask_f.reshape(B, 1, L)
    mask_add = ((mask_f - 1.0) * (NEG_BIG * inv_sqrt_d)).reshape(B, 1, L)

    # Strict-lower-triangular additive mask, precomputed once, VMEM resident.
    r = jnp.arange(L, dtype=jnp.int32)[:, None]
    c = jnp.arange(L, dtype=jnp.int32)[None, :]
    tril_add = jnp.where(r > c, -NEG_BIG * inv_sqrt_d, 0.0).astype(jnp.float32)

    kernel = functools.partial(_fused_gp_kernel, inner_dim=D,
                               head_sizes=tuple(head_sizes),
                               head_tril=tuple(head_tril))

    out_shape = [jax.ShapeDtypeStruct((B, n, L, L), out_dtype) for n in head_sizes]
    out_specs = [pl.BlockSpec((1, n, tq, L), lambda b, t: (b, 0, t, 0))
                 for n in head_sizes]
    in_specs = [
        pl.BlockSpec((1, L, H), lambda b, t: (b, 0, 0)),    # x (keys, full seq)
        pl.BlockSpec((1, tq, H), lambda b, t: (b, t, 0)),   # x (query tile)
        pl.BlockSpec((H, E * D), lambda b, t: (0, 0)),      # fused Wq (bf16, pre-scaled)
        pl.BlockSpec((H, E * D), lambda b, t: (0, 0)),      # fused Wk (bf16)
        pl.BlockSpec((1, E * D), lambda b, t: (0, 0)),      # fused bq (f32, pre-scaled)
        pl.BlockSpec((1, E * D), lambda b, t: (0, 0)),      # fused bk (f32)
        pl.BlockSpec((L, D), lambda b, t: (0, 0)),          # cos (keys)
        pl.BlockSpec((L, D), lambda b, t: (0, 0)),          # sin (keys)
        pl.BlockSpec((tq, D), lambda b, t: (t, 0)),         # cos (query tile)
        pl.BlockSpec((tq, D), lambda b, t: (t, 0)),         # sin (query tile)
        pl.BlockSpec((D, D), lambda b, t: (0, 0)),          # RoPE rotation matrix
        pl.BlockSpec((1, 1, L), lambda b, t: (b, 0, 0)),    # pad multiplier
        pl.BlockSpec((1, 1, L), lambda b, t: (b, 0, 0)),    # pad additive (scaled)
        pl.BlockSpec((tq, L), lambda b, t: (t, 0)),         # tril additive (scaled)
    ]

    outs = pl.pallas_call(
        kernel,
        out_shape=out_shape,
        grid_spec=pltpu.PrefetchScalarGridSpec(
            num_scalar_prefetch=0,
            grid=(B, nqt),
            in_specs=in_specs,
            out_specs=out_specs,
            scratch_shapes=[pltpu.VMEM((L, E * D), jnp.bfloat16)]),
        compiler_params=pltpu.CompilerParams(
            dimension_semantics=("parallel", "arbitrary"),
            vmem_limit_bytes=64 * 1024 * 1024),
    )(x_bf, x_bf, wq_bf, wk_bf, bq_fused, bk_fused,
      cos, sin, cos, sin, rot, mask_mul, mask_add, tril_add)
    return tuple(outs)


# ---------------------------------------------------------------------------
# Plain-JAX glue: RoPE tables, rotation matrix, parameter init / packing.
# ---------------------------------------------------------------------------
def rope_cos_sin(seq_len, dim):
    pos = jnp.arange(seq_len, dtype=jnp.float32)[:, None]
    idx = jnp.arange(dim // 2, dtype=jnp.float32)
    theta = jnp.power(10000.0, -2.0 * idx / dim)
    ang = pos * theta                                  # [L, D/2]
    cos = jnp.repeat(jnp.cos(ang), 2, axis=-1)         # [L, D] interleaved
    sin = jnp.repeat(jnp.sin(ang), 2, axis=-1)
    return cos, sin


def rope_rot_matrix(dim):
    # q2[..., 2j] = -q[..., 2j+1];  q2[..., 2j+1] = q[..., 2j]  <=>  q2 = q @ R
    ev = jnp.arange(0, dim, 2)
    od = jnp.arange(1, dim, 2)
    R = jnp.zeros((dim, dim), jnp.float32)
    R = R.at[od, ev].set(-1.0)
    R = R.at[ev, od].set(1.0)
    return R


def init_head_params(key, hidden, ent_type_size, inner_dim):
    """nn.Linear(hidden, ent*inner*2) split into per-ent-type q/k weights."""
    k1, k2 = jax.random.split(key)
    W = jax.random.normal(k1, (hidden, ent_type_size * inner_dim * 2),
                          jnp.float32) * 0.05
    b = jax.random.normal(k2, (ent_type_size * inner_dim * 2,),
                          jnp.float32) * 0.05
    W = W.reshape(hidden, ent_type_size, 2 * inner_dim)
    b = b.reshape(ent_type_size, 2 * inner_dim)
    Wq = jnp.transpose(W[:, :, :inner_dim], (1, 0, 2))   # [E, H, D]
    Wk = jnp.transpose(W[:, :, inner_dim:], (1, 0, 2))   # [E, H, D]
    bq = b[:, :inner_dim]                                # [E, D]
    bk = b[:, inner_dim:]                                # [E, D]
    return Wq, bq, Wk, bk


def pack_heads(per_head_params, inner_dim):
    """Fuse all heads along E and pre-fold 1/sqrt(D) into the q weights/bias."""
    scale = 1.0 / (inner_dim ** 0.5)
    wq, wk, bq, bk, sizes = [], [], [], [], []
    for (Wq, Bq, Wk, Bk) in per_head_params:
        E, H, D = Wq.shape
        sizes.append(E)
        wq.append(jnp.transpose(Wq, (1, 0, 2)).reshape(H, E * D) * scale)
        wk.append(jnp.transpose(Wk, (1, 0, 2)).reshape(H, E * D))
        bq.append(Bq.reshape(E * D) * scale)
        bk.append(Bk.reshape(E * D))
    wq_f = jnp.concatenate(wq, axis=1)                   # [H, E_tot*D]
    wk_f = jnp.concatenate(wk, axis=1)
    bq_f = jnp.concatenate(bq).reshape(1, -1)            # [1, E_tot*D]
    bk_f = jnp.concatenate(bk).reshape(1, -1)
    return wq_f, bq_f, wk_f, bk_f, tuple(sizes)


def erenet_forward(params, batch_token_ids, batch_mask_ids, batch_token_type_ids):
    # TODO(synk): the pretrained BERT/NeZha encoder (AutoModel.from_pretrained)
    # has no Pallas equivalent here; replaced by a deterministic synthetic
    # embedding encoder (token + token_type + position embeddings, tanh).
    tok = params['tok_emb'][batch_token_ids]
    typ = params['type_emb'][batch_token_type_ids]
    pos = params['pos_emb'][None, :batch_token_ids.shape[1]]
    h = jnp.tanh(tok + typ + pos)                        # [B, L, H]
    # nn.Dropout is identity at inference time.

    wq_f, bq_f, wk_f, bk_f, head_sizes = params['heads']
    mention, so_head, so_tail = erenet_heads(
        h, batch_mask_ids, wq_f, bq_f, wk_f, bk_f,
        params['cos'], params['sin'], params['rot'],
        head_sizes, params['head_tril'])
    return mention, so_head, so_tail


# Pure-JAX reference mirroring the torch RawGlobalPointer for sanity checking.
def ref_head(x, mask, Wq, bq, Wk, bk, cos, sin, *, tril_mask):
    E, _, D = Wq.shape
    L = x.shape[1]
    q = jnp.einsum('blh,ehd->beld', x, Wq) + bq[None, :, None, :]
    k = jnp.einsum('blh,ehd->beld', x, Wk) + bk[None, :, None, :]

    def rot(t):
        return jnp.stack([-t[..., 1::2], t[..., ::2]], axis=-1).reshape(t.shape)

    q = q * cos[None, None] + rot(q) * sin[None, None]
    k = k * cos[None, None] + rot(k) * sin[None, None]
    logits = jnp.einsum('bemd,bend->bemn', q, k)
    pad = mask[:, None, None, :]
    logits = logits * pad - (1.0 - pad) * NEG_BIG
    if tril_mask:
        tri = jnp.tril(jnp.ones((L, L), jnp.float32), -1)
        logits = logits - tri * NEG_BIG
    return logits / (D ** 0.5)


if __name__ == "__main__":
    B, L, H, D = 2, 16, 32, 64        # batch, seq, hidden_size, inner_dim
    VOCAB, SCHEMA_SIZE = 100, 3       # len(schema) chosen as 3 (synthetic)

    key = jax.random.PRNGKey(0)
    ks = jax.random.split(key, 8)

    mention_p = init_head_params(ks[3], H, 2, D)
    so_head_p = init_head_params(ks[4], H, SCHEMA_SIZE, D)
    so_tail_p = init_head_params(ks[5], H, SCHEMA_SIZE, D)
    cos, sin = rope_cos_sin(L, D)

    params = {
        'tok_emb':  jax.random.normal(ks[0], (VOCAB, H), jnp.float32) * 0.1,
        'type_emb': jax.random.normal(ks[1], (2, H), jnp.float32) * 0.1,
        'pos_emb':  jax.random.normal(ks[2], (L, H), jnp.float32) * 0.1,
        'heads':    pack_heads([mention_p, so_head_p, so_tail_p], D),
        'head_tril': (True, False, False),
        'cos': cos, 'sin': sin, 'rot': rope_rot_matrix(D),
    }

    batch_token_ids = jax.random.randint(ks[6], (B, L), 0, VOCAB)
    batch_token_type_ids = jnp.zeros((B, L), jnp.int32)
    batch_mask_ids = jnp.concatenate(
        [jnp.ones((B, 12), jnp.float32), jnp.zeros((B, 4), jnp.float32)], axis=1)

    outs = erenet_forward(params, batch_token_ids, batch_mask_ids,
                          batch_token_type_ids)
    outs = jax.block_until_ready(outs)

    # Sanity check against a pure-JAX reference of the torch semantics.
    h = jnp.tanh(params['tok_emb'][batch_token_ids]
                 + params['type_emb'][batch_token_type_ids]
                 + params['pos_emb'][None])
    refs = (
        ref_head(h, batch_mask_ids, *mention_p, cos, sin, tril_mask=True),
        ref_head(h, batch_mask_ids, *so_head_p, cos, sin, tril_mask=False),
        ref_head(h, batch_mask_ids, *so_tail_p, cos, sin, tril_mask=False),
    )
    for got, want in zip(outs, refs):
        assert got.shape == want.shape, (got.shape, want.shape)
        # bf16 MXU path -> loosened tolerance vs. the f32 reference.
        assert jnp.allclose(got, want, rtol=1e-2, atol=1e-2), \
            float(jnp.max(jnp.abs(got - want)))

    print("KERNEL_OK")
</pallas_src>

<mosaic_0001>
module attributes {stable_mosaic.version = 11 : i64} {
  func.func @_fused_gp_kernel(%arg0: i32, %arg1: i32, %arg2: memref<1x16x32xbf16, #tpu.memory_space<vmem>>, %arg3: memref<1x16x32xbf16, #tpu.memory_space<vmem>>, %arg4: memref<32x512xbf16, #tpu.memory_space<vmem>>, %arg5: memref<32x512xbf16, #tpu.memory_space<vmem>>, %arg6: memref<1x512xf32, #tpu.memory_space<vmem>>, %arg7: memref<1x512xf32, #tpu.memory_space<vmem>>, %arg8: memref<16x64xf32, #tpu.memory_space<vmem>>, %arg9: memref<16x64xf32, #tpu.memory_space<vmem>>, %arg10: memref<16x64xf32, #tpu.memory_space<vmem>>, %arg11: memref<16x64xf32, #tpu.memory_space<vmem>>, %arg12: memref<64x64xf32, #tpu.memory_space<vmem>>, %arg13: memref<1x1x16xf32, #tpu.memory_space<vmem>>, %arg14: memref<1x1x16xf32, #tpu.memory_space<vmem>>, %arg15: memref<16x16xf32, #tpu.memory_space<vmem>>, %arg16: memref<1x2x16x16xf32, #tpu.memory_space<vmem>>, %arg17: memref<1x3x16x16xf32, #tpu.memory_space<vmem>>, %arg18: memref<1x3x16x16xf32, #tpu.memory_space<vmem>>, %arg19: memref<16x512xbf16, #tpu.memory_space<vmem>>) attributes {dimension_semantics = [#tpu.dimension_semantics<parallel>, #tpu.dimension_semantics<arbitrary>], iteration_bounds = array<i64: 2, 1>, scalar_prefetch = 0 : i64, scratch_operands = 1 : i64, tpu.core_type = #tpu.core_type<tc>, window_params = [{transform_indices = @transform_0, window_bounds = array<i64: 1, 16, 32>}, {transform_indices = @transform_1, window_bounds = array<i64: 1, 16, 32>}, {pipeline_mode = #tpu.pipeline_mode<synchronous>, transform_indices = @transform_2, window_bounds = array<i64: 32, 512>}, {pipeline_mode = #tpu.pipeline_mode<synchronous>, transform_indices = @transform_3, window_bounds = array<i64: 32, 512>}, {pipeline_mode = #tpu.pipeline_mode<synchronous>, transform_indices = @transform_4, window_bounds = array<i64: 1, 512>}, {pipeline_mode = #tpu.pipeline_mode<synchronous>, transform_indices = @transform_5, window_bounds = array<i64: 1, 512>}, {pipeline_mode = #tpu.pipeline_mode<synchronous>, transform_indices = @transform_6, window_bounds = array<i64: 16, 64>}, {pipeline_mode = #tpu.pipeline_mode<synchronous>, transform_indices = @transform_7, window_bounds = array<i64: 16, 64>}, {transform_indices = @transform_8, window_bounds = array<i64: 16, 64>}, {transform_indices = @transform_9, window_bounds = array<i64: 16, 64>}, {pipeline_mode = #tpu.pipeline_mode<synchronous>, transform_indices = @transform_10, window_bounds = array<i64: 64, 64>}, {transform_indices = @transform_11, window_bounds = array<i64: 1, 1, 16>}, {transform_indices = @transform_12, window_bounds = array<i64: 1, 1, 16>}, {transform_indices = @transform_13, window_bounds = array<i64: 16, 16>}, {transform_indices = @transform_14, window_bounds = array<i64: 1, 2, 16, 16>}, {transform_indices = @transform_15, window_bounds = array<i64: 1, 3, 16, 16>}, {transform_indices = @transform_16, window_bounds = array<i64: 1, 3, 16, 16>}]} {
    %c0 = arith.constant 0 : index
    %c0_0 = arith.constant 0 : index
    %0 = vector.load %arg12[%c0, %c0_0] : memref<64x64xf32, #tpu.memory_space<vmem>>, vector<64x64xf32>
    %c0_i32 = arith.constant 0 : i32
    %1 = arith.cmpi eq, %arg1, %c0_i32 : i32
    %2 = arith.extui %1 : i1 to i32
    %c0_i32_1 = arith.constant 0 : i32
    %3 = arith.cmpi ne, %2, %c0_i32_1 : i32
    scf.if %3 {
      %c0_76 = arith.constant 0 : index
      %c0_77 = arith.constant 0 : index
      %c0_78 = arith.constant 0 : index
      %127 = vector.load %arg2[%c0_76, %c0_77, %c0_78] : memref<1x16x32xbf16, #tpu.memory_space<vmem>>, vector<1x16x32xbf16>
      %128 = vector.shape_cast %127 : vector<1x16x32xbf16> to vector<16x32xbf16>
      %c0_79 = arith.constant 0 : index
      %c0_80 = arith.constant 0 : index
      %129 = vector.load %arg5[%c0_79, %c0_80] : memref<32x512xbf16, #tpu.memory_space<vmem>>, vector<32x512xbf16>
      %cst_81 = arith.constant dense<0.000000e+00> : vector<16x512xf32>
      %130 = tpu.matmul %128, %129, %cst_81 {dimension_numbers = #tpu.dot_dimension_numbers<[1], [0], [0], [1], [0, 0, 1, 1], [], []>} : vector<16x32xbf16>, vector<32x512xbf16>, vector<16x512xf32> -> vector<16x512xf32>
      %c0_82 = arith.constant 0 : index
      %c0_83 = arith.constant 0 : index
      %131 = vector.load %arg7[%c0_82, %c0_83] : memref<1x512xf32, #tpu.memory_space<vmem>>, vector<1x512xf32>
      %132 = vector.broadcast %131 : vector<1x512xf32> to vector<16x512xf32>
      %133 = arith.addf %130, %132 : vector<16x512xf32>
      %c0_84 = arith.constant 0 : index
      %c0_85 = arith.constant 0 : index
      %134 = vector.load %arg8[%c0_84, %c0_85] : memref<16x64xf32, #tpu.memory_space<vmem>>, vector<16x64xf32>
      %c0_86 = arith.constant 0 : index
      %c0_87 = arith.constant 0 : index
      %135 = vector.load %arg9[%c0_86, %c0_87] : memref<16x64xf32, #tpu.memory_space<vmem>>, vector<16x64xf32>
      %136 = vector.extract_strided_slice %133 {offsets = [0, 0], sizes = [16, 64], strides = [1, 1]} : vector<16x512xf32> to vector<16x64xf32>
      %137 = arith.mulf %136, %134 : vector<16x64xf32>
      %cst_88 = arith.constant dense<0.000000e+00> : vector<16x64xf32>
      %138 = tpu.matmul %136, %0, %cst_88 {dimension_numbers = #tpu.dot_dimension_numbers<[1], [0], [0], [1], [0, 0, 1, 1], [], []>} : vector<16x64xf32>, vector<64x64xf32>, vector<16x64xf32> -> vector<16x64xf32>
      %139 = arith.mulf %138, %135 : vector<16x64xf32>
      %140 = arith.addf %137, %139 : vector<16x64xf32>
      %141 = vector.extract_strided_slice %133 {offsets = [0, 64], sizes = [16, 64], strides = [1, 1]} : vector<16x512xf32> to vector<16x64xf32>
      %142 = arith.mulf %141, %134 : vector<16x64xf32>
      %cst_89 = arith.constant dense<0.000000e+00> : vector<16x64xf32>
      %143 = tpu.matmul %141, %0, %cst_89 {dimension_numbers = #tpu.dot_dimension_numbers<[1], [0], [0], [1], [0, 0, 1, 1], [], []>} : vector<16x64xf32>, vector<64x64xf32>, vector<16x64xf32> -> vector<16x64xf32>
      %144 = arith.mulf %143, %135 : vector<16x64xf32>
      %145 = arith.addf %142, %144 : vector<16x64xf32>
      %146 = vector.extract_strided_slice %133 {offsets = [0, 128], sizes = [16, 64], strides = [1, 1]} : vector<16x512xf32> to vector<16x64xf32>
      %147 = arith.mulf %146, %134 : vector<16x64xf32>
      %cst_90 = arith.constant dense<0.000000e+00> : vector<16x64xf32>
      %148 = tpu.matmul %146, %0, %cst_90 {dimension_numbers = #tpu.dot_dimension_numbers<[1], [0], [0], [1], [0, 0, 1, 1], [], []>} : vector<16x64xf32>, vector<64x64xf32>, vector<16x64xf32> -> vector<16x64xf32>
      %149 = arith.mulf %148, %135 : vector<16x64xf32>
      %150 = arith.addf %147, %149 : vector<16x64xf32>
      %151 = vector.extract_strided_slice %133 {offsets = [0, 192], sizes = [16, 64], strides = [1, 1]} : vector<16x512xf32> to vector<16x64xf32>
      %152 = arith.mulf %151, %134 : vector<16x64xf32>
      %cst_91 = arith.constant dense<0.000000e+00> : vector<16x64xf32>
      %153 = tpu.matmul %151, %0, %cst_91 {dimension_numbers = #tpu.dot_dimension_numbers<[1], [0], [0], [1], [0, 0, 1, 1], [], []>} : vector<16x64xf32>, vector<64x64xf32>, vector<16x64xf32> -> vector<16x64xf32>
      %154 = arith.mulf %153, %135 : vector<16x64xf32>
      %155 = arith.addf %152, %154 : vector<16x64xf32>
      %156 = vector.extract_strided_slice %133 {offsets = [0, 256], sizes = [16, 64], strides = [1, 1]} : vector<16x512xf32> to vector<16x64xf32>
      %157 = arith.mulf %156, %134 : vector<16x64xf32>
      %cst_92 = arith.constant dense<0.000000e+00> : vector<16x64xf32>
      %158 = tpu.matmul %156, %0, %cst_92 {dimension_numbers = #tpu.dot_dimension_numbers<[1], [0], [0], [1], [0, 0, 1, 1], [], []>} : vector<16x64xf32>, vector<64x64xf32>, vector<16x64xf32> -> vector<16x64xf32>
      %159 = arith.mulf %158, %135 : vector<16x64xf32>
      %160 = arith.addf %157, %159 : vector<16x64xf32>
      %161 = vector.extract_strided_slice %133 {offsets = [0, 320], sizes = [16, 64], strides = [1, 1]} : vector<16x512xf32> to vector<16x64xf32>
      %162 = arith.mulf %161, %134 : vector<16x64xf32>
      %cst_93 = arith.constant dense<0.000000e+00> : vector<16x64xf32>
      %163 = tpu.matmul %161, %0, %cst_93 {dimension_numbers = #tpu.dot_dimension_numbers<[1], [0], [0], [1], [0, 0, 1, 1], [], []>} : vector<16x64xf32>, vector<64x64xf32>, vector<16x64xf32> -> vector<16x64xf32>
      %164 = arith.mulf %163, %135 : vector<16x64xf32>
      %165 = arith.addf %162, %164 : vector<16x64xf32>
      %166 = vector.extract_strided_slice %133 {offsets = [0, 384], sizes = [16, 64], strides = [1, 1]} : vector<16x512xf32> to vector<16x64xf32>
      %167 = arith.mulf %166, %134 : vector<16x64xf32>
      %cst_94 = arith.constant dense<0.000000e+00> : vector<16x64xf32>
      %168 = tpu.matmul %166, %0, %cst_94 {dimension_numbers = #tpu.dot_dimension_numbers<[1], [0], [0], [1], [0, 0, 1, 1], [], []>} : vector<16x64xf32>, vector<64x64xf32>, vector<16x64xf32> -> vector<16x64xf32>
      %169 = arith.mulf %168, %135 : vector<16x64xf32>
      %170 = arith.addf %167, %169 : vector<16x64xf32>
      %171 = vector.extract_strided_slice %133 {offsets = [0, 448], sizes = [16, 64], strides = [1, 1]} : vector<16x512xf32> to vector<16x64xf32>
      %172 = arith.mulf %171, %134 : vector<16x64xf32>
      %cst_95 = arith.constant dense<0.000000e+00> : vector<16x64xf32>
      %173 = tpu.matmul %171, %0, %cst_95 {dimension_numbers = #tpu.dot_dimension_numbers<[1], [0], [0], [1], [0, 0, 1, 1], [], []>} : vector<16x64xf32>, vector<64x64xf32>, vector<16x64xf32> -> vector<16x64xf32>
      %174 = arith.mulf %173, %135 : vector<16x64xf32>
      %175 = arith.addf %172, %174 : vector<16x64xf32>
      %176 = tpu.concatenate %140, %145, %150, %155, %160, %165, %170, %175 in 1 : vector<16x64xf32>, vector<16x64xf32>, vector<16x64xf32>, vector<16x64xf32>, vector<16x64xf32>, vector<16x64xf32>, vector<16x64xf32>, vector<16x64xf32> -> vector<16x512xf32>
      %177 = arith.truncf %176 : vector<16x512xf32> to vector<16x512xbf16>
      %c0_96 = arith.constant 0 : index
      %c0_97 = arith.constant 0 : index
      %178 = vector.load %arg19[%c0_96, %c0_97] : memref<16x512xbf16, #tpu.memory_space<vmem>>, vector<16x512xbf16>
      tpu.vector_store %arg19[%c0_96, %c0_97], %177 {strides = array<i32>} : memref<16x512xbf16, #tpu.memory_space<vmem>>, vector<16x512xbf16>,
    } else {
    }
    %c0_2 = arith.constant 0 : index
    %c0_3 = arith.constant 0 : index
    %c0_4 = arith.constant 0 : index
    %4 = vector.load %arg3[%c0_2, %c0_3, %c0_4] : memref<1x16x32xbf16, #tpu.memory_space<vmem>>, vector<1x16x32xbf16>
    %5 = vector.shape_cast %4 : vector<1x16x32xbf16> to vector<16x32xbf16>
    %c0_5 = arith.constant 0 : index
    %c0_6 = arith.constant 0 : index
    %6 = vector.load %arg4[%c0_5, %c0_6] : memref<32x512xbf16, #tpu.memory_space<vmem>>, vector<32x512xbf16>
    %cst = arith.constant dense<0.000000e+00> : vector<16x512xf32>
    %7 = tpu.matmul %5, %6, %cst {dimension_numbers = #tpu.dot_dimension_numbers<[1], [0], [0], [1], [0, 0, 1, 1], [], []>} : vector<16x32xbf16>, vector<32x512xbf16>, vector<16x512xf32> -> vector<16x512xf32>
    %c0_7 = arith.constant 0 : index
    %c0_8 = arith.constant 0 : index
    %8 = vector.load %arg6[%c0_7, %c0_8] : memref<1x512xf32, #tpu.memory_space<vmem>>, vector<1x512xf32>
    %9 = vector.broadcast %8 : vector<1x512xf32> to vector<16x512xf32>
    %10 = arith.addf %7, %9 : vector<16x512xf32>
    %c0_9 = arith.constant 0 : index
    %c0_10 = arith.constant 0 : index
    %11 = vector.load %arg10[%c0_9, %c0_10] : memref<16x64xf32, #tpu.memory_space<vmem>>, vector<16x64xf32>
    %c0_11 = arith.constant 0 : index
    %c0_12 = arith.constant 0 : index
    %12 = vector.load %arg11[%c0_11, %c0_12] : memref<16x64xf32, #tpu.memory_space<vmem>>, vector<16x64xf32>
    %c0_13 = arith.constant 0 : index
    %c0_14 = arith.constant 0 : index
    %c0_15 = arith.constant 0 : index
    %13 = vector.load %arg13[%c0_13, %c0_14, %c0_15] : memref<1x1x16xf32, #tpu.memory_space<vmem>>, vector<1x1x16xf32>
    %14 = vector.shape_cast %13 : vector<1x1x16xf32> to vector<1x16xf32>
    %15 = vector.shape_cast %14 : vector<1x16xf32> to vector<1x16xf32>
    %16 = vector.broadcast %15 : vector<1x16xf32> to vector<16x16xf32>
    %c0_16 = arith.constant 0 : index
    %c0_17 = arith.constant 0 : index
    %c0_18 = arith.constant 0 : index
    %17 = vector.load %arg14[%c0_16, %c0_17, %c0_18] : memref<1x1x16xf32, #tpu.memory_space<vmem>>, vector<1x1x16xf32>
    %18 = vector.shape_cast %17 : vector<1x1x16xf32> to vector<1x16xf32>
    %19 = vector.shape_cast %18 : vector<1x16xf32> to vector<1x16xf32>
    %20 = vector.broadcast %19 : vector<1x16xf32> to vector<16x16xf32>
    %c0_19 = arith.constant 0 : index
    %c0_20 = arith.constant 0 : index
    %21 = vector.load %arg15[%c0_19, %c0_20] : memref<16x16xf32, #tpu.memory_space<vmem>>, vector<16x16xf32>
    %22 = arith.addf %20, %21 : vector<16x16xf32>
    %23 = vector.extract_strided_slice %10 {offsets = [0, 0], sizes = [16, 64], strides = [1, 1]} : vector<16x512xf32> to vector<16x64xf32>
    %24 = arith.mulf %23, %11 : vector<16x64xf32>
    %cst_21 = arith.constant dense<0.000000e+00> : vector<16x64xf32>
    %25 = tpu.matmul %23, %0, %cst_21 {dimension_numbers = #tpu.dot_dimension_numbers<[1], [0], [0], [1], [0, 0, 1, 1], [], []>} : vector<16x64xf32>, vector<64x64xf32>, vector<16x64xf32> -> vector<16x64xf32>
    %26 = arith.mulf %25, %12 : vector<16x64xf32>
    %27 = arith.addf %24, %26 : vector<16x64xf32>
    %c0_22 = arith.constant 0 : index
    %c0_23 = arith.constant 0 : index
    %28 = vector.load %arg19[%c0_22, %c0_23] : memref<16x512xbf16, #tpu.memory_space<vmem>>, vector<16x64xbf16>
    %29 = arith.truncf %27 : vector<16x64xf32> to vector<16x64xbf16>
    %cst_24 = arith.constant dense<0.000000e+00> : vector<16x16xf32>
    %30 = tpu.matmul %29, %28, %cst_24 {dimension_numbers = #tpu.dot_dimension_numbers<[1], [1], [0], [0], [0, 0, 1, 0], [], []>} : vector<16x64xbf16>, vector<16x64xbf16>, vector<16x16xf32> -> vector<16x16xf32>
    %31 = arith.mulf %30, %16 : vector<16x16xf32>
    %32 = arith.addf %31, %22 : vector<16x16xf32>
    %c0_25 = arith.constant 0 : index
    %c0_26 = arith.constant 0 : index
    %c0_27 = arith.constant 0 : index
    %c0_28 = arith.constant 0 : index
    %33 = vector.load %arg16[%c0_25, %c0_26, %c0_27, %c0_28] : memref<1x2x16x16xf32, #tpu.memory_space<vmem>>, vector<1x1x16x16xf32>
    %34 = vector.shape_cast %33 : vector<1x1x16x16xf32> to vector<16x16xf32>
    %35 = vector.shape_cast %32 : vector<16x16xf32> to vector<1x1x16x16xf32>
    tpu.vector_store %arg16[%c0_25, %c0_26, %c0_27, %c0_28], %35 {strides = array<i32>} : memref<1x2x16x16xf32, #tpu.memory_space<vmem>>, vector<1x1x16x16xf32>,
    %36 = vector.extract_strided_slice %10 {offsets = [0, 64], sizes = [16, 64], strides = [1, 1]} : vector<16x512xf32> to vector<16x64xf32>
    %37 = arith.mulf %36, %11 : vector<16x64xf32>
    %cst_29 = arith.constant dense<0.000000e+00> : vector<16x64xf32>
    %38 = tpu.matmul %36, %0, %cst_29 {dimension_numbers = #tpu.dot_dimension_numbers<[1], [0], [0], [1], [0, 0, 1, 1], [], []>} : vector<16x64xf32>, vector<64x64xf32>, vector<16x64xf32> -> vector<16x64xf32>
    %39 = arith.mulf %38, %12 : vector<16x64xf32>
    %40 = arith.addf %37, %39 : vector<16x64xf32>
    %c0_30 = arith.constant 0 : index
    %c64 = arith.constant 64 : index
    %41 = vector.load %arg19[%c0_30, %c64] : memref<16x512xbf16, #tpu.memory_space<vmem>>, vector<16x64xbf16>
    %42 = arith.truncf %40 : vector<16x64xf32> to vector<16x64xbf16>
    %cst_31 = arith.constant dense<0.000000e+00> : vector<16x16xf32>
    %43 = tpu.matmul %42, %41, %cst_31 {dimension_numbers = #tpu.dot_dimension_numbers<[1], [1], [0], [0], [0, 0, 1, 0], [], []>} : vector<16x64xbf16>, vector<16x64xbf16>, vector<16x16xf32> -> vector<16x16xf32>
    %44 = arith.mulf %43, %16 : vector<16x16xf32>
    %45 = arith.addf %44, %22 : vector<16x16xf32>
    %c0_32 = arith.constant 0 : index
    %c1 = arith.constant 1 : index
    %c0_33 = arith.constant 0 : index
    %c0_34 = arith.constant 0 : index
    %46 = vector.load %arg16[%c0_32, %c1, %c0_33, %c0_34] : memref<1x2x16x16xf32, #tpu.memory_space<vmem>>, vector<1x1x16x16xf32>
    %47 = vector.shape_cast %46 : vector<1x1x16x16xf32> to vector<16x16xf32>
    %48 = vector.shape_cast %45 : vector<16x16xf32> to vector<1x1x16x16xf32>
    tpu.vector_store %arg16[%c0_32, %c1, %c0_33, %c0_34], %48 {strides = array<i32>} : memref<1x2x16x16xf32, #tpu.memory_space<vmem>>, vector<1x1x16x16xf32>,
    %49 = vector.extract_strided_slice %10 {offsets = [0, 128], sizes = [16, 64], strides = [1, 1]} : vector<16x512xf32> to vector<16x64xf32>
    %50 = arith.mulf %49, %11 : vector<16x64xf32>
    %cst_35 = arith.constant dense<0.000000e+00> : vector<16x64xf32>
    %51 = tpu.matmul %49, %0, %cst_35 {dimension_numbers = #tpu.dot_dimension_numbers<[1], [0], [0], [1], [0, 0, 1, 1], [], []>} : vector<16x64xf32>, vector<64x64xf32>, vector<16x64xf32> -> vector<16x64xf32>
    %52 = arith.mulf %51, %12 : vector<16x64xf32>
    %53 = arith.addf %50, %52 : vector<16x64xf32>
    %c0_36 = arith.constant 0 : index
    %c128 = arith.constant 128 : index
    %54 = vector.load %arg19[%c0_36, %c128] : memref<16x512xbf16, #tpu.memory_space<vmem>>, vector<16x64xbf16>
    %55 = arith.truncf %53 : vector<16x64xf32> to vector<16x64xbf16>
    %cst_37 = arith.constant dense<0.000000e+00> : vector<16x16xf32>
    %56 = tpu.matmul %55, %54, %cst_37 {dimension_numbers = #tpu.dot_dimension_numbers<[1], [1], [0], [0], [0, 0, 1, 0], [], []>} : vector<16x64xbf16>, vector<16x64xbf16>, vector<16x16xf32> -> vector<16x16xf32>
    %57 = arith.mulf %56, %16 : vector<16x16xf32>
    %58 = arith.addf %57, %20 : vector<16x16xf32>
    %c0_38 = arith.constant 0 : index
    %c0_39 = arith.constant 0 : index
    %c0_40 = arith.constant 0 : index
    %c0_41 = arith.constant 0 : index
    %59 = vector.load %arg17[%c0_38, %c0_39, %c0_40, %c0_41] : memref<1x3x16x16xf32, #tpu.memory_space<vmem>>, vector<1x1x16x16xf32>
    %60 = vector.shape_cast %59 : vector<1x1x16x16xf32> to vector<16x16xf32>
    %61 = vector.shape_cast %58 : vector<16x16xf32> to vector<1x1x16x16xf32>
    tpu.vector_store %arg17[%c0_38, %c0_39, %c0_40, %c0_41], %61 {strides = array<i32>} : memref<1x3x16x16xf32, #tpu.memory_space<vmem>>, vector<1x1x16x16xf32>,
    %62 = vector.extract_strided_slice %10 {offsets = [0, 192], sizes = [16, 64], strides = [1, 1]} : vector<16x512xf32> to vector<16x64xf32>
    %63 = arith.mulf %62, %11 : vector<16x64xf32>
    %cst_42 = arith.constant dense<0.000000e+00> : vector<16x64xf32>
    %64 = tpu.matmul %62, %0, %cst_42 {dimension_numbers = #tpu.dot_dimension_numbers<[1], [0], [0], [1], [0, 0, 1, 1], [], []>} : vector<16x64xf32>, vector<64x64xf32>, vector<16x64xf32> -> vector<16x64xf32>
    %65 = arith.mulf %64, %12 : vector<16x64xf32>
    %66 = arith.addf %63, %65 : vector<16x64xf32>
    %c0_43 = arith.constant 0 : index
    %c192 = arith.constant 192 : index
    %67 = vector.load %arg19[%c0_43, %c192] : memref<16x512xbf16, #tpu.memory_space<vmem>>, vector<16x64xbf16>
    %68 = arith.truncf %66 : vector<16x64xf32> to vector<16x64xbf16>
    %cst_44 = arith.constant dense<0.000000e+00> : vector<16x16xf32>
    %69 = tpu.matmul %68, %67, %cst_44 {dimension_numbers = #tpu.dot_dimension_numbers<[1], [1], [0], [0], [0, 0, 1, 0], [], []>} : vector<16x64xbf16>, vector<16x64xbf16>, vector<16x16xf32> -> vector<16x16xf32>
    %70 = arith.mulf %69, %16 : vector<16x16xf32>
    %71 = arith.addf %70, %20 : vector<16x16xf32>
    %c0_45 = arith.constant 0 : index
    %c1_46 = arith.constant 1 : index
    %c0_47 = arith.constant 0 : index
    %c0_48 = arith.constant 0 : index
    %72 = vector.load %arg17[%c0_45, %c1_46, %c0_47, %c0_48] : memref<1x3x16x16xf32, #tpu.memory_space<vmem>>, vector<1x1x16x16xf32>
    %73 = vector.shape_cast %72 : vector<1x1x16x16xf32> to vector<16x16xf32>
    %74 = vector.shape_cast %71 : vector<16x16xf32> to vector<1x1x16x16xf32>
    tpu.vector_store %arg17[%c0_45, %c1_46, %c0_47, %c0_48], %74 {strides = array<i32>} : memref<1x3x16x16xf32, #tpu.memory_space<vmem>>, vector<1x1x16x16xf32>,
    %75 = vector.extract_strided_slice %10 {offsets = [0, 256], sizes = [16, 64], strides = [1, 1]} : vector<16x512xf32> to vector<16x64xf32>
    %76 = arith.mulf %75, %11 : vector<16x64xf32>
    %cst_49 = arith.constant dense<0.000000e+00> : vector<16x64xf32>
    %77 = tpu.matmul %75, %0, %cst_49 {dimension_numbers = #tpu.dot_dimension_numbers<[1], [0], [0], [1], [0, 0, 1, 1], [], []>} : vector<16x64xf32>, vector<64x64xf32>, vector<16x64xf32> -> vector<16x64xf32>
    %78 = arith.mulf %77, %12 : vector<16x64xf32>
    %79 = arith.addf %76, %78 : vector<16x64xf32>
    %c0_50 = arith.constant 0 : index
    %c256 = arith.constant 256 : index
    %80 = vector.load %arg19[%c0_50, %c256] : memref<16x512xbf16, #tpu.memory_space<vmem>>, vector<16x64xbf16>
    %81 = arith.truncf %79 : vector<16x64xf32> to vector<16x64xbf16>
    %cst_51 = arith.constant dense<0.000000e+00> : vector<16x16xf32>
    %82 = tpu.matmul %81, %80, %cst_51 {dimension_numbers = #tpu.dot_dimension_numbers<[1], [1], [0], [0], [0, 0, 1, 0], [], []>} : vector<16x64xbf16>, vector<16x64xbf16>, vector<16x16xf32> -> vector<16x16xf32>
    %83 = arith.mulf %82, %16 : vector<16x16xf32>
    %84 = arith.addf %83, %20 : vector<16x16xf32>
    %c0_52 = arith.constant 0 : index
    %c2 = arith.constant 2 : index
    %c0_53 = arith.constant 0 : index
    %c0_54 = arith.constant 0 : index
    %85 = vector.load %arg17[%c0_52, %c2, %c0_53, %c0_54] : memref<1x3x16x16xf32, #tpu.memory_space<vmem>>, vector<1x1x16x16xf32>
    %86 = vector.shape_cast %85 : vector<1x1x16x16xf32> to vector<16x16xf32>
    %87 = vector.shape_cast %84 : vector<16x16xf32> to vector<1x1x16x16xf32>
    tpu.vector_store %arg17[%c0_52, %c2, %c0_53, %c0_54], %87 {strides = array<i32>} : memref<1x3x16x16xf32, #tpu.memory_space<vmem>>, vector<1x1x16x16xf32>,
    %88 = vector.extract_strided_slice %10 {offsets = [0, 320], sizes = [16, 64], strides = [1, 1]} : vector<16x512xf32> to vector<16x64xf32>
    %89 = arith.mulf %88, %11 : vector<16x64xf32>
    %cst_55 = arith.constant dense<0.000000e+00> : vector<16x64xf32>
    %90 = tpu.matmul %88, %0, %cst_55 {dimension_numbers = #tpu.dot_dimension_numbers<[1], [0], [0], [1], [0, 0, 1, 1], [], []>} : vector<16x64xf32>, vector<64x64xf32>, vector<16x64xf32> -> vector<16x64xf32>
    %91 = arith.mulf %90, %12 : vector<16x64xf32>
    %92 = arith.addf %89, %91 : vector<16x64xf32>
    %c0_56 = arith.constant 0 : index
    %c320 = arith.constant 320 : index
    %93 = vector.load %arg19[%c0_56, %c320] : memref<16x512xbf16, #tpu.memory_space<vmem>>, vector<16x64xbf16>
    %94 = arith.truncf %92 : vector<16x64xf32> to vector<16x64xbf16>
    %cst_57 = arith.constant dense<0.000000e+00> : vector<16x16xf32>
    %95 = tpu.matmul %94, %93, %cst_57 {dimension_numbers = #tpu.dot_dimension_numbers<[1], [1], [0], [0], [0, 0, 1, 0], [], []>} : vector<16x64xbf16>, vector<16x64xbf16>, vector<16x16xf32> -> vector<16x16xf32>
    %96 = arith.mulf %95, %16 : vector<16x16xf32>
    %97 = arith.addf %96, %20 : vector<16x16xf32>
    %c0_58 = arith.constant 0 : index
    %c0_59 = arith.constant 0 : index
    %c0_60 = arith.constant 0 : index
    %c0_61 = arith.constant 0 : index
    %98 = vector.load %arg18[%c0_58, %c0_59, %c0_60, %c0_61] : memref<1x3x16x16xf32, #tpu.memory_space<vmem>>, vector<1x1x16x16xf32>
    %99 = vector.shape_cast %98 : vector<1x1x16x16xf32> to vector<16x16xf32>
    %100 = vector.shape_cast %97 : vector<16x16xf32> to vector<1x1x16x16xf32>
    tpu.vector_store %arg18[%c0_58, %c0_59, %c0_60, %c0_61], %100 {strides = array<i32>} : memref<1x3x16x16xf32, #tpu.memory_space<vmem>>, vector<1x1x16x16xf32>,
    %101 = vector.extract_strided_slice %10 {offsets = [0, 384], sizes = [16, 64], strides = [1, 1]} : vector<16x512xf32> to vector<16x64xf32>
    %102 = arith.mulf %101, %11 : vector<16x64xf32>
    %cst_62 = arith.constant dense<0.000000e+00> : vector<16x64xf32>
    %103 = tpu.matmul %101, %0, %cst_62 {dimension_numbers = #tpu.dot_dimension_numbers<[1], [0], [0], [1], [0, 0, 1, 1], [], []>} : vector<16x64xf32>, vector<64x64xf32>, vector<16x64xf32> -> vector<16x64xf32>
    %104 = arith.mulf %103, %12 : vector<16x64xf32>
    %105 = arith.addf %102, %104 : vector<16x64xf32>
    %c0_63 = arith.constant 0 : index
    %c384 = arith.constant 384 : index
    %106 = vector.load %arg19[%c0_63, %c384] : memref<16x512xbf16, #tpu.memory_space<vmem>>, vector<16x64xbf16>
    %107 = arith.truncf %105 : vector<16x64xf32> to vector<16x64xbf16>
    %cst_64 = arith.constant dense<0.000000e+00> : vector<16x16xf32>
    %108 = tpu.matmul %107, %106, %cst_64 {dimension_numbers = #tpu.dot_dimension_numbers<[1], [1], [0], [0], [0, 0, 1, 0], [], []>} : vector<16x64xbf16>, vector<16x64xbf16>, vector<16x16xf32> -> vector<16x16xf32>
    %109 = arith.mulf %108, %16 : vector<16x16xf32>
    %110 = arith.addf %109, %20 : vector<16x16xf32>
    %c0_65 = arith.constant 0 : index
    %c1_66 = arith.constant 1 : index
    %c0_67 = arith.constant 0 : index
    %c0_68 = arith.constant 0 : index
    %111 = vector.load %arg18[%c0_65, %c1_66, %c0_67, %c0_68] : memref<1x3x16x16xf32, #tpu.memory_space<vmem>>, vector<1x1x16x16xf32>
    %112 = vector.shape_cast %111 : vector<1x1x16x16xf32> to vector<16x16xf32>
    %113 = vector.shape_cast %110 : vector<16x16xf32> to vector<1x1x16x16xf32>
    tpu.vector_store %arg18[%c0_65, %c1_66, %c0_67, %c0_68], %113 {strides = array<i32>} : memref<1x3x16x16xf32, #tpu.memory_space<vmem>>, vector<1x1x16x16xf32>,
    %114 = vector.extract_strided_slice %10 {offsets = [0, 448], sizes = [16, 64], strides = [1, 1]} : vector<16x512xf32> to vector<16x64xf32>
    %115 = arith.mulf %114, %11 : vector<16x64xf32>
    %cst_69 = arith.constant dense<0.000000e+00> : vector<16x64xf32>
    %116 = tpu.matmul %114, %0, %cst_69 {dimension_numbers = #tpu.dot_dimension_numbers<[1], [0], [0], [1], [0, 0, 1, 1], [], []>} : vector<16x64xf32>, vector<64x64xf32>, vector<16x64xf32> -> vector<16x64xf32>
    %117 = arith.mulf %116, %12 : vector<16x64xf32>
    %118 = arith.addf %115, %117 : vector<16x64xf32>
    %c0_70 = arith.constant 0 : index
    %c448 = arith.constant 448 : index
    %119 = vector.load %arg19[%c0_70, %c448] : memref<16x512xbf16, #tpu.memory_space<vmem>>, vector<16x64xbf16>
    %120 = arith.truncf %118 : vector<16x64xf32> to vector<16x64xbf16>
    %cst_71 = arith.constant dense<0.000000e+00> : vector<16x16xf32>
    %121 = tpu.matmul %120, %119, %cst_71 {dimension_numbers = #tpu.dot_dimension_numbers<[1], [1], [0], [0], [0, 0, 1, 0], [], []>} : vector<16x64xbf16>, vector<16x64xbf16>, vector<16x16xf32> -> vector<16x16xf32>
    %122 = arith.mulf %121, %16 : vector<16x16xf32>
    %123 = arith.addf %122, %20 : vector<16x16xf32>
    %c0_72 = arith.constant 0 : index
    %c2_73 = arith.constant 2 : index
    %c0_74 = arith.constant 0 : index
    %c0_75 = arith.constant 0 : index
    %124 = vector.load %arg18[%c0_72, %c2_73, %c0_74, %c0_75] : memref<1x3x16x16xf32, #tpu.memory_space<vmem>>, vector<1x1x16x16xf32>
    %125 = vector.shape_cast %124 : vector<1x1x16x16xf32> to vector<16x16xf32>
    %126 = vector.shape_cast %123 : vector<16x16xf32> to vector<1x1x16x16xf32>
    tpu.vector_store %arg18[%c0_72, %c2_73, %c0_74, %c0_75], %126 {strides = array<i32>} : memref<1x3x16x16xf32, #tpu.memory_space<vmem>>, vector<1x1x16x16xf32>,
    return
  }
  func.func @transform_0(%arg0: i32, %arg1: i32) -> (i32, i32, i32) {
    %c0_i32 = arith.constant 0 : i32
    %c0_i32_0 = arith.constant 0 : i32
    %c0_i32_1 = arith.constant 0 : i32
    return %arg0, %c0_i32, %c0_i32_0 : i32, i32, i32
  }
  func.func @transform_1(%arg0: i32, %arg1: i32) -> (i32, i32, i32) {
    %c0_i32 = arith.constant 0 : i32
    %c0_i32_0 = arith.constant 0 : i32
    return %arg0, %arg1, %c0_i32 : i32, i32, i32
  }
  func.func @transform_2(%arg0: i32, %arg1: i32) -> (i32, i32) {
    %c0_i32 = arith.constant 0 : i32
    %c0_i32_0 = arith.constant 0 : i32
    %c0_i32_1 = arith.constant 0 : i32
    return %c0_i32, %c0_i32_0 : i32, i32
  }
  func.func @transform_3(%arg0: i32, %arg1: i32) -> (i32, i32) {
    %c0_i32 = arith.constant 0 : i32
    %c0_i32_0 = arith.constant 0 : i32
    %c0_i32_1 = arith.constant 0 : i32
    return %c0_i32, %c0_i32_0 : i32, i32
  }
  func.func @transform_4(%arg0: i32, %arg1: i32) -> (i32, i32) {
    %c0_i32 = arith.constant 0 : i32
    %c0_i32_0 = arith.constant 0 : i32
    %c0_i32_1 = arith.constant 0 : i32
    return %c0_i32, %c0_i32_0 : i32, i32
  }
  func.func @transform_5(%arg0: i32, %arg1: i32) -> (i32, i32) {
    %c0_i32 = arith.constant 0 : i32
    %c0_i32_0 = arith.constant 0 : i32
    %c0_i32_1 = arith.constant 0 : i32
    return %c0_i32, %c0_i32_0 : i32, i32
  }
  func.func @transform_6(%arg0: i32, %arg1: i32) -> (i32, i32) {
    %c0_i32 = arith.constant 0 : i32
    %c0_i32_0 = arith.constant 0 : i32
    %c0_i32_1 = arith.constant 0 : i32
    return %c0_i32, %c0_i32_0 : i32, i32
  }
  func.func @transform_7(%arg0: i32, %arg1: i32) -> (i32, i32) {
    %c0_i32 = arith.constant 0 : i32
    %c0_i32_0 = arith.constant 0 : i32
    %c0_i32_1 = arith.constant 0 : i32
    return %c0_i32, %c0_i32_0 : i32, i32
  }
  func.func @transform_8(%arg0: i32, %arg1: i32) -> (i32, i32) {
    %c0_i32 = arith.constant 0 : i32
    %c0_i32_0 = arith.constant 0 : i32
    return %arg1, %c0_i32 : i32, i32
  }
  func.func @transform_9(%arg0: i32, %arg1: i32) -> (i32, i32) {
    %c0_i32 = arith.constant 0 : i32
    %c0_i32_0 = arith.constant 0 : i32
    return %arg1, %c0_i32 : i32, i32
  }
  func.func @transform_10(%arg0: i32, %arg1: i32) -> (i32, i32) {
    %c0_i32 = arith.constant 0 : i32
    %c0_i32_0 = arith.constant 0 : i32
    %c0_i32_1 = arith.constant 0 : i32
    return %c0_i32, %c0_i32_0 : i32, i32
  }
  func.func @transform_11(%arg0: i32, %arg1: i32) -> (i32, i32, i32) {
    %c0_i32 = arith.constant 0 : i32
    %c0_i32_0 = arith.constant 0 : i32
    %c0_i32_1 = arith.constant 0 : i32
    return %arg0, %c0_i32, %c0_i32_0 : i32, i32, i32
  }
  func.func @transform_12(%arg0: i32, %arg1: i32) -> (i32, i32, i32) {
    %c0_i32 = arith.constant 0 : i32
    %c0_i32_0 = arith.constant 0 : i32
    %c0_i32_1 = arith.constant 0 : i32
    return %arg0, %c0_i32, %c0_i32_0 : i32, i32, i32
  }
  func.func @transform_13(%arg0: i32, %arg1: i32) -> (i32, i32) {
    %c0_i32 = arith.constant 0 : i32
    %c0_i32_0 = arith.constant 0 : i32
    return %arg1, %c0_i32 : i32, i32
  }
  func.func @transform_14(%arg0: i32, %arg1: i32) -> (i32, i32, i32, i32) {
    %c0_i32 = arith.constant 0 : i32
    %c0_i32_0 = arith.constant 0 : i32
    %c0_i32_1 = arith.constant 0 : i32
    return %arg0, %c0_i32, %arg1, %c0_i32_0 : i32, i32, i32, i32
  }
  func.func @transform_15(%arg0: i32, %arg1: i32) -> (i32, i32, i32, i32) {
    %c0_i32 = arith.constant 0 : i32
    %c0_i32_0 = arith.constant 0 : i32
    %c0_i32_1 = arith.constant 0 : i32
    return %arg0, %c0_i32, %arg1, %c0_i32_0 : i32, i32, i32, i32
  }
  func.func @transform_16(%arg0: i32, %arg1: i32) -> (i32, i32, i32, i32) {
    %c0_i32 = arith.constant 0 : i32
    %c0_i32_0 = arith.constant 0 : i32
    %c0_i32_1 = arith.constant 0 : i32
    return %arg0, %c0_i32, %arg1, %c0_i32_0 : i32, i32, i32, i32
  }
}

</mosaic_0001>

<bundles_post_ra>
// kernel: tpu_custom_call.1
= control target key start
LH: loop header
LB: loop body
LE: loop exit
PB: predicated region body
PF: predicated region fallthrough
CT: control target
= control target key end

     0   :  { %s6694_s0 = inlined_call_operand.hbm [shape: bf16[2,16,32], index: 0, kind: input, shape index: {}]   ;;  %s6695_s1 = inlined_call_operand.hbm [shape: bf16[2,16,32], index: 1, kind: input, shape index: {}]   ;;  %s6696_s2 = inlined_call_operand.hbm [shape: bf16[32,512], index: 2, kind: input, shape index: {}]   ;;  %s6697_s3 = inlined_call_operand.hbm [shape: bf16[32,512], index: 3, kind: input, shape index: {}]   ;;  %s6698_s4 = inlined_call_operand.hbm [shape: f32[1,512], index: 4, kind: input, shape index: {}]   ;;  %s6699_s5 = inlined_call_operand.hbm [shape: f32[1,512], index: 5, kind: input, shape index: {}]   ;;  %s6700_s6 = inlined_call_operand.hbm [shape: f32[16,64], index: 6, kind: input, shape index: {}]   ;;  %s6701_s7 = inlined_call_operand.hbm [shape: f32[16,64], index: 7, kind: input, shape index: {}]   ;;  %s6702_s8 = inlined_call_operand.hbm [shape: f32[16,64], index: 8, kind: input, shape index: {}]   ;;  %s6703_s9 = inlined_call_operand.hbm [shape: f32[16,64], index: 9, kind: input, shape index: {}]   ;;  %s6704_s10 = inlined_call_operand.hbm [shape: f32[64,64], index: 10, kind: input, shape index: {}]   ;;  %s6705_s11 = inlined_call_operand.hbm [shape: f32[2,1,16], index: 11, kind: input, shape index: {}]   ;;  %s6706_s12 = inlined_call_operand.hbm [shape: f32[2,1,16], index: 12, kind: input, shape index: {}]   ;;  %s6707_s13 = inlined_call_operand.hbm [shape: f32[16,16], index: 13, kind: input, shape index: {}]   ;;  %s6708_s14 = inlined_call_operand.hbm [shape: f32[2,2,16,16], index: 14, kind: output, shape index: {0}]   ;;  %s6709_s15 = inlined_call_operand.hbm [shape: f32[2,3,16,16], index: 15, kind: output, shape index: {1}]   ;;  %s6710_s16 = inlined_call_operand.hbm [shape: f32[2,3,16,16], index: 16, kind: output, shape index: {2}]  }
   0x1   :  { %6746 = sst [smem:[#allocation48_spill]] %s6694_s0 }
   0x2   :  { %6747 = sst [smem:[#allocation49_spill]] %s6695_s1 }
   0x3   :  { %6748 = sst [smem:[#allocation50_spill]] %s6696_s2 }
   0x4   :  { %6749 = sst [smem:[#allocation51_spill]] %s6697_s3 }
   0x5   :  { %6750 = sst [smem:[#allocation52_spill]] %s6698_s4 }
   0x6   :  { %6751 = sst [smem:[#allocation53_spill]] %s6699_s5 }
   0x7   :  { %6752 = sst [smem:[#allocation54_spill]] %s6700_s6 }
   0x8   :  { %6753 = sst [smem:[#allocation55_spill]] %s6701_s7 }
   0x9   :  { %6754 = sst [smem:[#allocation56_spill]] %s6702_s8 }
   0xa   :  { %6755 = sst [smem:[#allocation57_spill]] %s6703_s9 }
   0xb   :  { %6756 = sst [smem:[#allocation58_spill]] %s6704_s10 }
   0xc   :  { %6757 = sst [smem:[#allocation59_spill]] %s6705_s11 }
   0xd   :  { %6758 = sst [smem:[#allocation60_spill]] %s6707_s13 }
   0xe   :  { %6759 = sst [smem:[#allocation61_spill]] %s6708_s14 }
   0xf   :  { %6760 = sst [smem:[#allocation62_spill]] %s6709_s15 }
  0x10   :  { %6761 = sst [smem:[#allocation63_spill]] %s6710_s16 }
  0x11   :  { %22 = vsyncpa [#allocation4], 0 }
  0x12   :  { %24 = vsyncpa [#allocation4 + $0x1], 0 }
  0x13   :  { %25 = vsyncpa [#allocation7], 0 }
  0x14   :  { %27 = vsyncpa [#allocation7 + $0x1], 0 }
  0x15   :  { %28 = vsyncpa [#allocation10], 0 }
  0x16   :  { %29 = vsyncpa [#allocation13], 0 }
  0x17   :  { %30 = vsyncpa [#allocation16], 0 }
  0x18   :  { %31 = vsyncpa [#allocation19], 0 }
  0x19   :  { %32 = vsyncpa [#allocation22], 0 }
  0x1a   :  { %34 = vsyncpa [#allocation22 + $0x1], 0 }
  0x1b   :  { %35 = vsyncpa [#allocation25], 0 }
  0x1c   :  { %36 = vsyncpa [#allocation5], 0 }
  0x1d   :  { %38 = vsyncpa [#allocation5 + $0x1], 0 }
  0x1e   :  { %39 = vsyncpa [#allocation28], 0 }
  0x1f   :  { %41 = vsyncpa [#allocation28 + $0x1], 0  ;;  %s5406_s21 = smov 0   ;;  %s5408_s22 = smov 0  }
  0x20   :  { %s5410_s23 = smov 0   ;;  %s5412_s24 = smov 0  }
  0x21   :  { %s5414_s25 = smov 0   ;;  %s5416_s26 = smov 0  }
  0x22 LB: > { %6762 = sst [smem:[#allocation41_spill]] %s5270_s21  ;;  %s5437_s27 = sadd.s32 4294967295, %s5290_s26   ;;  %s5290_s26 = sphi %s5416_s26, %s47_s26   ;;  %s5286_s25 = sphi %s5414_s25, %s6831_s25   ;;  %s5282_s24 = sphi %s5412_s24, %s6830_s24   ;;  %s5278_s23 = sphi %s5410_s23, %s6826_s23   ;;  %s5274_s22 = sphi %s5408_s22, %s6829_s22   ;;  %s5270_s21 = sphi %s5406_s21, %s6828_s21  }
  0x23   : > { %6763 = sst [smem:[#allocation42_spill]] %s5278_s23  ;;  %p3585_p0 = scmp.ge.s32.totalorder %s5290_s26, 1 }
  0x24   : > { %6764 = sst [smem:[#allocation43_spill]] %s5282_s24  ;;  %p6721_p1 = scmp.eq.s32.totalorder %s5437_s27, 0 }
  0x25   : > { %p479_p2 = scmp.lt.s32.totalorder %s5290_s26, 3  ;;  %s5292_s29 = smov [#allocation8]  }
  0x26   : > { %s491_s30 = sshll.u32 %s5292_s29, 4  ;;  %s5293_s17 = smov [#allocation9]   ;;  %s5446_s30 = int_to_ptr.vmem [resolvable:$true] %s491_s30 }
  0x27   : > { %p5442_p3 = pnand %p3585_p0, %p479_p2  ;;  %s504_s18 = sshll.u32 %s5293_s17, 4  ;;  %s5457_s18 = int_to_ptr.vmem [resolvable:$true] %s504_s18 }
  0x28   : > { %s5294_s19 = smov [#allocation12]   ;;  %s6768_s2 = sld [smem:[#allocation50_spill]] }
  0x29   : > { %s6765_s28 = scalar_select %p5442_p3, 1, 0 }
  0x2a   : > { %p4544_p4 = pneg %p5442_p3  ;;  %s5459_s20 = sshll.u32 %s5294_s19, 4  ;;  %s530_s20 = int_to_ptr.vmem [resolvable:$true] %s5459_s20 }
  0x2b   : > { %6766 = sst [smem:[#allocation44_spill]] %s6765_s28 }
  0x2c   : > { %p5453_p6 = pnand %p4544_p4, %p6721_p1 }
  0x2e   : > { %s6767_s0 = scalar_select %p5453_p6, 1, 0 }
  0x2f   : > { %s4716_s14 = scalar_lea.hbm %s6768_s2, 1024  ;;  %p5469_p8 = pneg %p5453_p6 }
  0x30   : > { %p4717_p7 = scmp.ne.s32.totalorder %s6768_s2, %s4716_s14  ;;  %p4723_p11 = scmp.lt.u32.totalorder %s4716_s14, %s6768_s2 }
  0x31   : > { %s6769_s28 = scalar_select %p5469_p8, 1, 0 }
  0x32   : > { %p4719_p9 = pnand %p5469_p8, %p4717_p7 }
  0x34   : > { %p4720_p10 = pneg %p4719_p9 }
  0x36   : > { %p4725_p12 = pnand %p4723_p11, %p4720_p10 }
  0x38   : > { %4728 = shalt.err (!%p4725_p12)
}
  0x39   : > { %s4729_s15 = scalar_lea.vmem %s5446_s30, 1024  ;;  %p4737_p4 = scmp.lt.s32.totalorder %s5446_s30, %s5446_s30 }
  0x3a   : > { %p4730_p13 = scmp.ne.s32.totalorder %s5446_s30, %s4729_s15  ;;  %p4738_p5 = scmp.lt.s32.totalorder %s4729_s15, %s4729_s15 }
  0x3c   : > { %p4732_p0 = pnand %p4730_p13, %p5469_p8  ;;  %p4739_p7 = por %p4738_p5, %p4737_p4 }
  0x3e   : > { %p4733_p2 = pneg %p4732_p0 }
  0x40   : > { %p4740_p9 = pnand %p4739_p7, %p4733_p2 }
  0x42   : > { %4743 = shalt.err (!%p4740_p9)
}
  0x43   : > { %s5295_s16 = smov 256   ;;  %s5296_s14 = smov 16  }
  0x44   : > { %4547 = dma.hbm_to_vmem [thread:$0]  (!%p5453_p6), %s6768_s2, 1024, %s5446_s30, [#allocation7], %s5295_s16, %s5295_s16, %s5296_s14  }
  0x45   : > { %s6770_s3 = sld [smem:[#allocation51_spill]] }
  0x4b   : > { %s4744_s1 = scalar_lea.hbm %s6770_s3, 1024 }
  0x4c   : > { %p4745_p5 = scmp.ne.s32.totalorder %s6770_s3, %s4744_s1  ;;  %p4751_p12 = scmp.lt.u32.totalorder %s4744_s1, %s6770_s3 }
  0x4e   : > { %p4747_p10 = pnand %p4745_p5, %p5469_p8 }
  0x50   : > { %p4748_p11 = pneg %p4747_p10 }
  0x52   : > { %p4753_p13 = pnand %p4751_p12, %p4748_p11 }
  0x54   : > { %4756 = shalt.err (!%p4753_p13)
}
  0x55   : > { %s4757_s30 = scalar_lea.vmem %s5457_s18, 1024  ;;  %p4765_p7 = scmp.lt.s32.totalorder %s5457_s18, %s5457_s18 }
  0x56   : > { %p4758_p0 = scmp.ne.s32.totalorder %s5457_s18, %s4757_s30  ;;  %p4766_p9 = scmp.lt.s32.totalorder %s4757_s30, %s4757_s30 }
  0x58   : > { %p4760_p2 = pnand %p4758_p0, %p5469_p8  ;;  %p4767_p5 = por %p4766_p9, %p4765_p7 }
  0x5a   : > { %p4761_p4 = pneg %p4760_p2 }
  0x5c   : > { %p4768_p10 = pnand %p4767_p5, %p4761_p4 }
  0x5e   : > { %4771 = shalt.err (!%p4768_p10)
}
  0x5f   : > { %4550 = dma.hbm_to_vmem [thread:$0]  (!%p5453_p6), %s6770_s3, 1024, %s5457_s18, [#allocation10], %s5295_s16, %s5295_s16, %s5296_s14  }
  0x60   : > { %s6771_s5 = sld [smem:[#allocation53_spill]] }
  0x66   : > { %s4772_s24 = scalar_lea.hbm %s6771_s5, 64 }
  0x67   : > { %p4773_p11 = scmp.ne.s32.totalorder %s6771_s5, %s4772_s24  ;;  %p4779_p0 = scmp.lt.u32.totalorder %s4772_s24, %s6771_s5 }
  0x69   : > { %p4775_p12 = pnand %p4773_p11, %p5469_p8 }
  0x6b   : > { %p4776_p13 = pneg %p4775_p12 }
  0x6d   : > { %p4781_p2 = pnand %p4779_p0, %p4776_p13 }
  0x6f   : > { %4784 = shalt.err (!%p4781_p2)
}
  0x70   : > { %s4785_s30 = scalar_lea.vmem %s530_s20, 64  ;;  %p4793_p5 = scmp.lt.s32.totalorder %s530_s20, %s530_s20 }
  0x71   : > { %p4786_p4 = scmp.ne.s32.totalorder %s530_s20, %s4785_s30  ;;  %p4794_p10 = scmp.lt.s32.totalorder %s4785_s30, %s4785_s30 }
  0x73   : > { %p4788_p7 = pnand %p4786_p4, %p5469_p8  ;;  %p4795_p1 = por %p4794_p10, %p4793_p5 }
  0x75   : > { %p4789_p9 = pneg %p4788_p7 }
  0x77   : > { %p4796_p3 = pnand %p4795_p1, %p4789_p9 }
  0x79   : > { %4799 = shalt.err (!%p4796_p3)
}
  0x7a   : > { %4556 = dma.hbm_to_vmem [thread:$0]  (!%p5453_p6), %s6771_s5, 64, %s530_s20, [#allocation13]  }
  0x7b   : > { %s5297_s14 = smov [#allocation15]   ;;  %s5298_s8 = smov [#allocation18]  }
  0x7c   : > { %s552_s1 = sshll.u32 %s5297_s14, 4  ;;  %s584_s10 = sshll.u32 %s5298_s8, 4  ;;  %s553_s1 = int_to_ptr.vmem [resolvable:$true] %s552_s1  ;;  %s585_s10 = int_to_ptr.vmem [resolvable:$true] %s584_s10 }
  0x7d   : > { %s6772_s7 = sld [smem:[#allocation55_spill]] }
  0x83   : > { %s4800_s29 = scalar_lea.hbm %s6772_s7, 256 }
  0x84   : > { %p4801_p1 = scmp.ne.s32.totalorder %s6772_s7, %s4800_s29  ;;  %p4807_p12 = scmp.lt.u32.totalorder %s4800_s29, %s6772_s7 }
  0x86   : > { %p4803_p3 = pnand %p4801_p1, %p5469_p8 }
  0x88   : > { %p4804_p11 = pneg %p4803_p3 }
  0x8a   : > { %p4809_p13 = pnand %p4807_p12, %p4804_p11 }
  0x8c   : > { %4812 = shalt.err (!%p4809_p13)
}
  0x8d   : > { %s4813_s20 = scalar_lea.vmem %s553_s1, 256  ;;  %p4821_p7 = scmp.lt.s32.totalorder %s553_s1, %s553_s1 }
  0x8e   : > { %p4814_p0 = scmp.ne.s32.totalorder %s553_s1, %s4813_s20  ;;  %p4822_p9 = scmp.lt.s32.totalorder %s4813_s20, %s4813_s20 }
  0x90   : > { %p4816_p2 = pnand %p4814_p0, %p5469_p8  ;;  %p4823_p5 = por %p4822_p9, %p4821_p7 }
  0x92   : > { %p4817_p4 = pneg %p4816_p2 }
  0x94   : > { %p4824_p10 = pnand %p4823_p5, %p4817_p4 }
  0x96   : > { %4827 = shalt.err (!%p4824_p10)
}
  0x97   : > { %s6724_s18 = smov 128   ;;  %s6726_s16 = smov 8  }
  0x98   : > { %4562 = dma.hbm_to_vmem [thread:$0]  (!%p5453_p6), %s6772_s7, 256, %s553_s1, [#allocation16], %s6724_s18, %s6724_s18, %s6726_s16  }
  0x99   : > { %s6773_s9 = sld [smem:[#allocation57_spill]] }
  0x9f   : > { %s4828_s29 = scalar_lea.hbm %s6773_s9, 256 }
  0xa0   : > { %p4829_p1 = scmp.ne.s32.totalorder %s6773_s9, %s4828_s29  ;;  %p4835_p12 = scmp.lt.u32.totalorder %s4828_s29, %s6773_s9 }
  0xa2   : > { %p4831_p3 = pnand %p4829_p1, %p5469_p8 }
  0xa4   : > { %p4832_p11 = pneg %p4831_p3 }
  0xa6   : > { %p4837_p13 = pnand %p4835_p12, %p4832_p11 }
  0xa8   : > { %4840 = shalt.err (!%p4837_p13)
}
  0xa9   : > { %s4841_s20 = scalar_lea.vmem %s585_s10, 256  ;;  %p4849_p7 = scmp.lt.s32.totalorder %s585_s10, %s585_s10 }
  0xaa   : > { %p4842_p0 = scmp.ne.s32.totalorder %s585_s10, %s4841_s20  ;;  %p4850_p9 = scmp.lt.s32.totalorder %s4841_s20, %s4841_s20 }
  0xac   : > { %p4844_p2 = pnand %p4842_p0, %p5469_p8  ;;  %p4851_p5 = por %p4850_p9, %p4849_p7 }
  0xae   : > { %p4845_p4 = pneg %p4844_p2 }
  0xb0   : > { %p4852_p10 = pnand %p4851_p5, %p4845_p4 }
  0xb2   : > { %4855 = shalt.err (!%p4852_p10)
}
  0xb3   : > { %4568 = dma.hbm_to_vmem [thread:$0]  (!%p5453_p6), %s6773_s9, 256, %s585_s10, [#allocation19], %s6724_s18, %s6724_s18, %s6726_s16  }
  0xb4   : > { %s6723_s8 = sadd.s32 4294967294, %s5290_s26   ;;  %s59_s13 = sadd.s32 1, %s5286_s25 }
  0xb5   : > { %s66_s24 = sadd.s32 1, %s5278_s23  ;;  %p61_p1 = scmp.ge.s32.totalorder %s59_s13, 2 }
  0xb6   : > { %p73_p3 = scmp.ne.s32.totalorder %s5278_s23, %s5274_s22  ;;  %p74_p11 = scmp.eq.s32.totalorder %s5290_s26, 0 }
  0xb7   : > { %p79_p12 = scmp.ne.s32.totalorder %s5274_s22, %s5270_s21  ;;  %s6833_s13 = smov (%p61_p1, %s59_s13), 0 }
  0xb8   : > { %6774 = sst [smem:[#allocation45_spill]] %s6833_s13  ;;  %p75_p13 = por %p74_p11, %p73_p3 }
  0xb9   : > { %p6775_p0 = scmp.eq.s32.totalorder %s5437_s27, 0  ;;  %s63_s29 = ssub.s32 %s5286_s25, %s6833_s13 }
  0xba   : > { %p410_p4 = scmp.eq.s32.totalorder %s5437_s27, 1  ;;  %p64_p7 = scmp.eq.s32.totalorder %s63_s29, 0 }
  0xbb   : > { %p5586_p2 = por %p6775_p0, %p79_p12  ;;  %p416_p9 = scmp.eq.s32.totalorder %s6723_s8, 1 }
  0xbc   : > { %p5595_p5 = por %p410_p4, %p73_p3  ;;  %p4608_p10 = scmp.lt.s32.totalorder %s5290_s26, 2 }
  0xbd   : > { %s6776_s10 = scalar_select %p5586_p2, 1, 0 }
  0xbe   : > { %s6777_s17 = scalar_select %p5595_p5, 1, 0 }
  0xbf   : > { %s5601_s19 = scalar_select %p64_p7, %s5278_s23, %s66_s24  }
  0xc0   : > { %p5603_p1 = por %p416_p9, %p79_p12  ;;  %s5608_s30 = sand.u32 1, %s5278_s23  }
  0xc1   : > { %6778 = sst [smem:[#allocation46_spill]] %s5601_s19  ;;  %p5610_p11 = pnand %p4608_p10, %p75_p13 }
  0xc2   : > { %s6779_s15 = scalar_select %p5603_p1, 1, 0 }
  0xc3   : > { %s6781_s20 = scalar_select %p5610_p11, 1, 0 }
  0xc4   : > { %6780 = sst [smem:[#allocation47_spill]] %s6779_s15  ;;  %s6730_s1 = sand.u32 1, %s5290_s26  }
  0xc5   : > { %s6728_s14 = sshll.u32 %s5286_s25, 4  ;;  %s674_s29 = scalar_lea.vmem [#allocation21], %s5608_s30 }
  0xc6   : > { %s681_s8 = sshll.u32 %s674_s29, 4  ;;  %s6782_s11 = sld [smem:[#allocation59_spill]]  ;;  %s5624_s8 = int_to_ptr.vmem [resolvable:$true] %s681_s8 }
  0xc7   : > { %s5628_s2 = scalar_lea.sflag [#allocation22], %s6730_s1  ;;  %p5634_p12 = pneg %p5610_p11 }
  0xc9   : > { %s6783_s29 = scalar_select %p5634_p12, 1, 0 }
  0xcc   : > { %s5622_s16 = scalar_lea.hbm %s6782_s11, %s6728_s14  ;;  %s4861_s14 = scalar_lea.hbm %s6782_s11, 32 }
  0xcd   : > { %s4856_s3 = scalar_lea.hbm %s5622_s16, 16  ;;  %p4862_p4 = scmp.lt.u32.totalorder %s5622_s16, %s6782_s11 }
  0xce   : > { %p4857_p3 = scmp.ne.s32.totalorder %s5622_s16, %s4856_s3  ;;  %p4863_p7 = scmp.lt.u32.totalorder %s4861_s14, %s4856_s3 }
  0xcf   : > { %p4865_p10 = scmp.lt.u32.totalorder %s4856_s3, %s5622_s16 }
  0xd0   : > { %p4859_p13 = pnand %p5634_p12, %p4857_p3  ;;  %p4864_p9 = por %p4863_p7, %p4862_p4 }
  0xd2   : > { %p4860_p0 = pneg %p4859_p13  ;;  %p4866_p1 = por %p4865_p10, %p4864_p9 }
  0xd4   : > { %p4867_p5 = pnand %p4866_p1, %p4860_p0 }
  0xd6   : > { %4870 = shalt.err (!%p4867_p5)
}
  0xd7   : > { %s4871_s1 = scalar_lea.vmem %s5624_s8, 16  ;;  %s5301_s18 = smov [#allocation21]  }
  0xd8   : > { %p4872_p3 = scmp.ne.s32.totalorder %s5624_s8, %s4871_s1  ;;  %s4876_s24 = sshll.u32 %s5301_s18, 4  ;;  %s4877_s24 = int_to_ptr.vmem [resolvable:$false] %s4876_s24 }
  0xd9   : > { %s4878_s5 = scalar_lea.vmem %s4877_s24, 32  ;;  %p4879_p6 = scmp.lt.s32.totalorder %s5624_s8, %s4877_s24 }
  0xda   : > { %p4874_p13 = pnand %p4872_p3, %p5634_p12  ;;  %p4880_p8 = scmp.lt.s32.totalorder %s4878_s5, %s4871_s1 }
  0xdc   : > { %p4875_p2 = pneg %p4874_p13  ;;  %p4881_p4 = por %p4880_p8, %p4879_p6 }
  0xde   : > { %p4882_p7 = pnand %p4881_p4, %p4875_p2 }
  0xe0   : > { %4885 = shalt.err (!%p4882_p7)
}
  0xe1   : > { %4584 = dma.hbm_to_vmem [thread:$0]  (!%p5610_p11), %s5622_s16, 16, %s5624_s8, %s5628_s2  }
  0xe2   : > { %s6784_s3 = sshll.u32 %s5286_s25, 4  ;;  %s5302_s9 = smov [#allocation11]  }
  0xe3   : > { %s5663_s18 = scalar_lea.hbm %s6706_s12, %s6784_s3  ;;  %s518_s24 = sshll.u32 %s5302_s9, 4  ;;  %s519_s24 = int_to_ptr.vmem [resolvable:$true] %s518_s24 }
  0xe4   : > { %s5303_s1 = smov [#allocation14]   ;;  %s6785_s4 = sld [smem:[#allocation52_spill]] }
  0xe5   : > { %s539_s5 = sshll.u32 %s5303_s1, 4  ;;  %p6786_p8 = scmp.ne.s32.totalorder %s6769_s28, 0  ;;  %s540_s5 = int_to_ptr.vmem [resolvable:$true] %s539_s5 }
  0xea   : > { %s4886_s19 = scalar_lea.hbm %s6785_s4, 64 }
  0xeb   : > { %p4887_p6 = scmp.ne.s32.totalorder %s6785_s4, %s4886_s19  ;;  %p4893_p1 = scmp.lt.u32.totalorder %s4886_s19, %s6785_s4 }
  0xed   : > { %p4889_p2 = pnand %p4887_p6, %p6786_p8 }
  0xef   : > { %p4890_p5 = pneg %p4889_p2 }
  0xf1   : > { %p4895_p0 = pnand %p4893_p1, %p4890_p5 }
  0xf3   : > { %4898 = shalt.err (!%p4895_p0)
}
  0xf4   : > { %s4899_s9 = scalar_lea.vmem %s519_s24, 64  ;;  %p4907_p13 = scmp.lt.s32.totalorder %s519_s24, %s519_s24 }
  0xf5   : > { %p4900_p9 = scmp.ne.s32.totalorder %s519_s24, %s4899_s9  ;;  %p4908_p4 = scmp.lt.s32.totalorder %s4899_s9, %s4899_s9 }
  0xf7   : > { %p4902_p10 = pnand %p4900_p9, %p6786_p8  ;;  %p4909_p7 = por %p4908_p4, %p4907_p13 }
  0xf9   : > { %p4903_p3 = pneg %p4902_p10 }
  0xfb   : > { %p4910_p11 = pnand %p4909_p7, %p4903_p3 }
  0xfd   : > { %4913 = shalt.err (!%p4910_p11)
}
  0xfe   : > { %p6787_p6 = scmp.ne.s32.totalorder %s6767_s0, 0  ;;  %s6788_s6 = sld [smem:[#allocation54_spill]] }
 0x100   : > { %4553 = dma.hbm_to_vmem [thread:$0]  (!%p6787_p6), %s6785_s4, 64, %s519_s24, [#allocation10]  }
 0x104   : > { %s4914_s15 = scalar_lea.hbm %s6788_s6, 256 }
 0x105   : > { %p4915_p2 = scmp.ne.s32.totalorder %s6788_s6, %s4914_s15  ;;  %p4921_p11 = scmp.lt.u32.totalorder %s4914_s15, %s6788_s6 }
 0x107   : > { %p4917_p5 = pnand %p4915_p2, %p6786_p8 }
 0x109   : > { %p4918_p1 = pneg %p4917_p5 }
 0x10b   : > { %p4923_p0 = pnand %p4921_p11, %p4918_p1 }
 0x10d   : > { %4926 = shalt.err (!%p4923_p0)
}
 0x10e   : > { %s4927_s16 = scalar_lea.vmem %s540_s5, 256  ;;  %p4935_p13 = scmp.lt.s32.totalorder %s540_s5, %s540_s5 }
 0x10f   : > { %p4928_p9 = scmp.ne.s32.totalorder %s540_s5, %s4927_s16  ;;  %p4936_p4 = scmp.lt.s32.totalorder %s4927_s16, %s4927_s16 }
 0x111   : > { %p4930_p10 = pnand %p4928_p9, %p6786_p8  ;;  %p4937_p7 = por %p4936_p4, %p4935_p13 }
 0x113   : > { %p4931_p3 = pneg %p4930_p10 }
 0x115   : > { %p4938_p12 = pnand %p4937_p7, %p4931_p3 }
 0x117   : > { %4941 = shalt.err (!%p4938_p12)
}
 0x118   : > { %s6789_s24 = smov 8   ;;  %s6790_s8 = smov 128  }
 0x119   : > { %4559 = dma.hbm_to_vmem [thread:$0]  (!%p6787_p6), %s6788_s6, 256, %s540_s5, [#allocation13], %s6790_s8, %s6790_s8, %s6789_s24  }
 0x11a   : > { %s5304_s23 = smov [#allocation17]   ;;  %s5305_s19 = smov [#allocation20]  }
 0x11b   : > { %s568_s13 = sshll.u32 %s5304_s23, 4  ;;  %s597_s15 = sshll.u32 %s5305_s19, 4  ;;  %s569_s13 = int_to_ptr.vmem [resolvable:$true] %s568_s13  ;;  %s598_s15 = int_to_ptr.vmem [resolvable:$true] %s597_s15 }
 0x11c   : > { %s6791_s14 = sld [smem:[#allocation56_spill]] }
 0x122   : > { %s4942_s1 = scalar_lea.hbm %s6791_s14, 256 }
 0x123   : > { %p4943_p12 = scmp.ne.s32.totalorder %s6791_s14, %s4942_s1  ;;  %p4949_p1 = scmp.lt.u32.totalorder %s4942_s1, %s6791_s14 }
 0x125   : > { %p4945_p2 = pnand %p4943_p12, %p6786_p8 }
 0x127   : > { %p4946_p5 = pneg %p4945_p2 }
 0x129   : > { %p4951_p11 = pnand %p4949_p1, %p4946_p5 }
 0x12b   : > { %4954 = shalt.err (!%p4951_p11)
}
 0x12c   : > { %s4955_s5 = scalar_lea.vmem %s569_s13, 256  ;;  %p4963_p3 = scmp.lt.s32.totalorder %s569_s13, %s569_s13 }
 0x12d   : > { %p4956_p0 = scmp.ne.s32.totalorder %s569_s13, %s4955_s5  ;;  %p4964_p13 = scmp.lt.s32.totalorder %s4955_s5, %s4955_s5 }
 0x12f   : > { %p4958_p9 = pnand %p4956_p0, %p6786_p8  ;;  %p4965_p4 = por %p4964_p13, %p4963_p3 }
 0x131   : > { %p4959_p10 = pneg %p4958_p9 }
 0x133   : > { %p4966_p7 = pnand %p4965_p4, %p4959_p10 }
 0x135   : > { %4969 = shalt.err (!%p4966_p7)
}
 0x136   : > { %4565 = dma.hbm_to_vmem [thread:$0]  (!%p6787_p6), %s6791_s14, 256, %s569_s13, [#allocation16], %s6790_s8, %s6790_s8, %s6789_s24  }
 0x137   : > { %s6792_s19 = sld [smem:[#allocation58_spill]] }
 0x13d   : > { %s4970_s3 = scalar_lea.hbm %s6792_s19, 1024 }
 0x13e   : > { %p4971_p12 = scmp.ne.s32.totalorder %s6792_s19, %s4970_s3  ;;  %p4977_p1 = scmp.lt.u32.totalorder %s4970_s3, %s6792_s19 }
 0x140   : > { %p4973_p2 = pnand %p4971_p12, %p6786_p8 }
 0x142   : > { %p4974_p5 = pneg %p4973_p2 }
 0x144   : > { %p4979_p11 = pnand %p4977_p1, %p4974_p5 }
 0x146   : > { %4982 = shalt.err (!%p4979_p11)
}
 0x147   : > { %s4983_s5 = scalar_lea.vmem %s598_s15, 1024  ;;  %p4991_p3 = scmp.lt.s32.totalorder %s598_s15, %s598_s15 }
 0x148   : > { %p4984_p0 = scmp.ne.s32.totalorder %s598_s15, %s4983_s5  ;;  %p4992_p13 = scmp.lt.s32.totalorder %s4983_s5, %s4983_s5 }
 0x14a   : > { %p4986_p9 = pnand %p4984_p0, %p6786_p8  ;;  %p4993_p4 = por %p4992_p13, %p4991_p3 }
 0x14c   : > { %p4987_p10 = pneg %p4986_p9 }
 0x14e   : > { %p4994_p7 = pnand %p4993_p4, %p4987_p10 }
 0x150   : > { %4997 = shalt.err (!%p4994_p7)
}
 0x151   : > { %4571 = dma.hbm_to_vmem [thread:$0]  (!%p6787_p6), %s6792_s19, 1024, %s598_s15, [#allocation19], %s6790_s8, %s6790_s8, %s6789_s24  }
 0x152   : > { %s5306_s21 = smov [#allocation24]   ;;  %s3597_s23 = sshll.u32 %s5608_s30, 3 }
 0x153   : > { %s613_s11 = sshll.u32 %s5306_s21, 4  ;;  %s6793_s1 = sld [smem:[#allocation60_spill]]  ;;  %s614_s11 = int_to_ptr.vmem [resolvable:$true] %s613_s11 }
 0x159   : > { %s4998_s16 = scalar_lea.hbm %s6793_s1, 256 }
 0x15a   : > { %p4999_p12 = scmp.ne.s32.totalorder %s6793_s1, %s4998_s16  ;;  %p5005_p1 = scmp.lt.u32.totalorder %s4998_s16, %s6793_s1 }
 0x15c   : > { %p5001_p2 = pnand %p4999_p12, %p6786_p8 }
 0x15e   : > { %p5002_p5 = pneg %p5001_p2 }
 0x160   : > { %p5007_p11 = pnand %p5005_p1, %p5002_p5 }
 0x162   : > { %5010 = shalt.err (!%p5007_p11)
}
 0x163   : > { %s5011_s15 = scalar_lea.vmem %s614_s11, 256  ;;  %p5019_p3 = scmp.lt.s32.totalorder %s614_s11, %s614_s11 }
 0x164   : > { %p5012_p0 = scmp.ne.s32.totalorder %s614_s11, %s5011_s15  ;;  %p5020_p13 = scmp.lt.s32.totalorder %s5011_s15, %s5011_s15 }
 0x166   : > { %p5014_p9 = pnand %p5012_p0, %p6786_p8  ;;  %p5021_p4 = por %p5020_p13, %p5019_p3 }
 0x168   : > { %p5015_p10 = pneg %p5014_p9 }
 0x16a   : > { %p5022_p7 = pnand %p5021_p4, %p5015_p10 }
 0x16c   : > { %5025 = shalt.err (!%p5022_p7)
}
 0x16d   : > { %4574 = dma.hbm_to_vmem [thread:$0]  (!%p6787_p6), %s6793_s1, 256, %s614_s11, [#allocation25], %s6790_s8, %s6790_s8, %s6789_s24  }
 0x16e   : > { %s3700_s28 = sshll.u32 %s5286_s25, 7  ;;  %s6794_s7 = sld [smem:[#allocation48_spill]] }
 0x16f   : > { %s631_s0 = scalar_lea.vmem [#allocation3], %s3597_s23  ;;  %s628_s5 = scalar_lea.sflag [#allocation4], %s5608_s30 }
 0x170   : > { %s638_s9 = sshll.u32 %s631_s0, 4  ;;  %p6795_p6 = scmp.ne.s32.totalorder %s6783_s29, 0  ;;  %s5778_s9 = int_to_ptr.vmem [resolvable:$true] %s638_s9 }
 0x174   : > { %s5774_s16 = scalar_lea.hbm %s6794_s7, %s3700_s28  ;;  %s5031_s11 = scalar_lea.hbm %s6794_s7, 256 }
 0x175   : > { %s5026_s13 = scalar_lea.hbm %s5774_s16, 128  ;;  %p5032_p5 = scmp.lt.u32.totalorder %s5774_s16, %s6794_s7 }
 0x176   : > { %p5027_p8 = scmp.ne.s32.totalorder %s5774_s16, %s5026_s13  ;;  %p5033_p1 = scmp.lt.u32.totalorder %s5031_s11, %s5026_s13 }
 0x177   : > { %p5035_p0 = scmp.lt.u32.totalorder %s5026_s13, %s5774_s16 }
 0x178   : > { %p5029_p12 = pnand %p5027_p8, %p6795_p6  ;;  %p5034_p11 = por %p5033_p1, %p5032_p5 }
 0x17a   : > { %p5030_p2 = pneg %p5029_p12  ;;  %p5036_p9 = por %p5035_p0, %p5034_p11 }
 0x17c   : > { %p5037_p10 = pnand %p5036_p9, %p5030_p2 }
 0x17e   : > { %5040 = shalt.err (!%p5037_p10)
}
 0x17f   : > { %s5041_s4 = scalar_lea.vmem %s5778_s9, 128  ;;  %s5307_s21 = smov [#allocation3]  }
 0x180   : > { %p5042_p3 = scmp.ne.s32.totalorder %s5778_s9, %s5041_s4  ;;  %s5046_s3 = sshll.u32 %s5307_s21, 4  ;;  %s5047_s3 = int_to_ptr.vmem [resolvable:$false] %s5046_s3 }
 0x181   : > { %s5048_s0 = scalar_lea.vmem %s5047_s3, 256  ;;  %p5049_p7 = scmp.lt.s32.totalorder %s5778_s9, %s5047_s3 }
 0x182   : > { %p5044_p13 = pnand %p5042_p3, %p6795_p6  ;;  %p5050_p8 = scmp.lt.s32.totalorder %s5048_s0, %s5041_s4 }
 0x184   : > { %p5045_p4 = pneg %p5044_p13  ;;  %p5051_p12 = por %p5050_p8, %p5049_p7 }
 0x186   : > { %p5052_p5 = pnand %p5051_p12, %p5045_p4 }
 0x188   : > { %5055 = shalt.err (!%p5052_p5)
}
 0x189   : > { %s5308_s13 = smov 64   ;;  %s5309_s24 = smov 4  }
 0x18a   : > { %p6796_p2 = scmp.ne.s32.totalorder %s6781_s20, 0  ;;  %s6797_s15 = sld [smem:[#allocation49_spill]] }
 0x18b   : > { %s652_s4 = scalar_lea.vmem [#allocation6], %s3597_s23  ;;  %s6798_s3 = sand.u32 1, %s5290_s26  }
 0x18c   : > { %4578 = dma.hbm_to_vmem [thread:$0]  (!%p6796_p2), %s5774_s16, 128, %s5778_s9, %s628_s5, %s5308_s13, %s5308_s13, %s5309_s24  }
 0x18d   : > { %s661_s21 = sshll.u32 %s652_s4, 4  ;;  %s5820_s0 = scalar_lea.sflag [#allocation7], %s6798_s3  ;;  %s5816_s21 = int_to_ptr.vmem [resolvable:$true] %s661_s21 }
 0x190   : > { %s5812_s6 = scalar_lea.hbm %s6797_s15, %s3700_s28  ;;  %s5061_s9 = scalar_lea.hbm %s6797_s15, 256 }
 0x191   : > { %s5056_s1 = scalar_lea.hbm %s5812_s6, 128  ;;  %p5062_p9 = scmp.lt.u32.totalorder %s5812_s6, %s6797_s15 }
 0x192   : > { %p5057_p1 = scmp.ne.s32.totalorder %s5812_s6, %s5056_s1  ;;  %p5063_p10 = scmp.lt.u32.totalorder %s5061_s9, %s5056_s1 }
 0x193   : > { %p5065_p13 = scmp.lt.u32.totalorder %s5056_s1, %s5812_s6 }
 0x194   : > { %p5059_p11 = pnand %p5057_p1, %p6795_p6  ;;  %p5064_p3 = por %p5063_p10, %p5062_p9 }
 0x196   : > { %p5060_p0 = pneg %p5059_p11  ;;  %p5066_p4 = por %p5065_p13, %p5064_p3 }
 0x198   : > { %p5067_p7 = pnand %p5066_p4, %p5060_p0 }
 0x19a   : > { %5070 = shalt.err (!%p5067_p7)
}
 0x19b   : > { %s5071_s23 = scalar_lea.vmem %s5816_s21, 128  ;;  %s5310_s11 = smov [#allocation6]  }
 0x19c   : > { %p5072_p8 = scmp.ne.s32.totalorder %s5816_s21, %s5071_s23  ;;  %s5076_s4 = sshll.u32 %s5310_s11, 4  ;;  %s5077_s4 = int_to_ptr.vmem [resolvable:$false] %s5076_s4 }
 0x19d   : > { %s5078_s3 = scalar_lea.vmem %s5077_s4, 256  ;;  %p5079_p1 = scmp.lt.s32.totalorder %s5816_s21, %s5077_s4 }
 0x19e   : > { %p5074_p12 = pnand %p5072_p8, %p6795_p6  ;;  %p5080_p11 = scmp.lt.s32.totalorder %s5078_s3, %s5071_s23 }
 0x1a0   : > { %p5075_p5 = pneg %p5074_p12  ;;  %p5081_p9 = por %p5080_p11, %p5079_p1 }
 0x1a2   : > { %p5082_p10 = pnand %p5081_p9, %p5075_p5 }
 0x1a4   : > { %5085 = shalt.err (!%p5082_p10)
}
 0x1a5   : > { %4581 = dma.hbm_to_vmem [thread:$0]  (!%p6796_p2), %s5812_s6, 128, %s5816_s21, %s5820_s0, %s5308_s13, %s5308_s13, %s5309_s24  }
 0x1a6   : > { %s691_s1 = scalar_lea.vmem [#allocation23], %s5608_s30  ;;  %s5086_s28 = scalar_lea.hbm %s5663_s18, 16 }
 0x1a7   : > { %s698_s16 = sshll.u32 %s691_s1, 4  ;;  %p5087_p0 = scmp.ne.s32.totalorder %s5663_s18, %s5086_s28  ;;  %s699_s16 = int_to_ptr.vmem [resolvable:$true] %s698_s16 }
 0x1a8   : > { %s5091_s8 = scalar_lea.hbm %s6706_s12, 32  ;;  %p5092_p4 = scmp.lt.u32.totalorder %s5663_s18, %s6706_s12 }
 0x1a9   : > { %p5089_p3 = pnand %p5087_p0, %p6795_p6  ;;  %p5093_p7 = scmp.lt.u32.totalorder %s5091_s8, %s5086_s28 }
 0x1aa   : > { %p5095_p12 = scmp.lt.u32.totalorder %s5086_s28, %s5663_s18 }
 0x1ab   : > { %p5090_p13 = pneg %p5089_p3  ;;  %p5094_p8 = por %p5093_p7, %p5092_p4 }
 0x1ad   : > { %p5096_p5 = por %p5095_p12, %p5094_p8 }
 0x1af   : > { %p5097_p1 = pnand %p5096_p5, %p5090_p13 }
 0x1b1   : > { %5100 = shalt.err (!%p5097_p1)
}
 0x1b2   : > { %s5101_s30 = scalar_lea.vmem %s699_s16, 16  ;;  %s5311_s13 = smov [#allocation23]  }
 0x1b3   : > { %p5102_p11 = scmp.ne.s32.totalorder %s699_s16, %s5101_s30  ;;  %s5106_s24 = sshll.u32 %s5311_s13, 4  ;;  %s5107_s24 = int_to_ptr.vmem [resolvable:$false] %s5106_s24 }
 0x1b4   : > { %s5108_s6 = scalar_lea.vmem %s5107_s24, 32  ;;  %p5109_p0 = scmp.lt.s32.totalorder %s699_s16, %s5107_s24 }
 0x1b5   : > { %p5104_p9 = pnand %p5102_p11, %p6795_p6  ;;  %p5110_p3 = scmp.lt.s32.totalorder %s5108_s6, %s5101_s30 }
 0x1b7   : > { %p5105_p10 = pneg %p5104_p9  ;;  %p5111_p2 = por %p5110_p3, %p5109_p0 }
 0x1b9   : > { %p5112_p4 = pnand %p5111_p2, %p5105_p10 }
 0x1bb   : > { %5115 = shalt.err (!%p5112_p4)
}
 0x1bc   : > { %p6799_p7 = scmp.ne.s32.totalorder %s6781_s20, 0  ;;  %s6800_s21 = sld [smem:[#allocation44_spill]] }
 0x1be   : > { %4587 = dma.hbm_to_vmem [thread:$0]  (!%p6799_p7), %s5663_s18, 16, %s699_s16, %s5628_s2  }
 0x1c2   : > { %p6801_p13 = scmp.ne.s32.totalorder %s6800_s21, 0 }
 0x1c3   : > { %s5869_s29 = sand.u32 (!%p6801_p13), 1, %s5274_s22   ;;  %p6802_p6 = scmp.ne.s32.totalorder (!%p6801_p13), %s6776_s10, 0 }
 0x1c4   : > { %707 = sbr.rel (%p6801_p13) target bundleno = 3998 (0xf9e), region = 76  ;;  %s3606_s0 = sshll.u32 (!%p6801_p13), %s5869_s29, 3 }
 0x1c5   : > { %s710_s4 = scalar_lea.sflag (!%p6801_p13), [#allocation4], %s5869_s29  ;;  %s5873_s3 = scalar_lea.vmem (!%p6801_p13), [#allocation3], %s3606_s0 }
 0x1cb   : > { %5225 = dma.done.wait (%p6802_p6), %s710_s4, 128  }
 0x1cc   : > { %5227 = vsyncadd (%p6802_p6), %s710_s4, 4294967168  ;;  %s5880_s2 = sand.u32 1, %s5437_s27   ;;  %s5883_s18 = scalar_lea.vmem [#allocation6], %s3606_s0 }
 0x1cd   : > { %s719_s20 = scalar_lea.sflag [#allocation7], %s5880_s2 }
 0x1ce   : > { %5229 = dma.done.wait (%p6802_p6), %s719_s20, 128  }
 0x1cf   : > { %5231 = vsyncadd (%p6802_p6), %s719_s20, 4294967168  ;;  %p6803_p2 = scmp.eq.s32.totalorder %s5437_s27, 0 }
 0x1d1   : > { %5233 = dma.done.wait (%p6803_p2), [#allocation7], 1024   ;;  %p6804_p8 = pmov %p6803_p2 }
 0x1d2   : > { %p6805_p12 = pmov %p6803_p2 }
 0x1d3   : > { %5235 = vsyncadd (%p6804_p8), [#allocation7], 4294966272 }
 0x1d4   : > { %5237 = dma.done.wait (%p6805_p12), [#allocation10], 1088   ;;  %p6806_p5 = pmov %p6803_p2 }
 0x1d5   : > { %p6807_p1 = pmov %p6803_p2 }
 0x1d6   : > { %5239 = vsyncadd (%p6806_p5), [#allocation10], 4294966208 }
 0x1d7   : > { %5241 = dma.done.wait (%p6807_p1), [#allocation13], 320   ;;  %p6808_p11 = pmov %p6807_p1 }
 0x1d8   : > { %p6809_p9 = pmov %p6807_p1 }
 0x1d9   : > { %5243 = vsyncadd (%p6808_p11), [#allocation13], 4294966976 }
 0x1da   : > { %5245 = dma.done.wait (%p6809_p9), [#allocation16], 512   ;;  %p6810_p10 = pmov %p6807_p1 }
 0x1db   : > { %p6811_p0 = pmov %p6807_p1 }
 0x1dc   : > { %5247 = vsyncadd (%p6810_p10), [#allocation16], 4294966784 }
 0x1dd   : > { %5249 = dma.done.wait (%p6811_p0), [#allocation19], 1280   ;;  %p6812_p3 = pmov %p6811_p0 }
 0x1de   : > { %s764_s1 = scalar_lea.sflag [#allocation22], %s5880_s2  ;;  %s766_s16 = scalar_lea.vmem [#allocation21], %s5869_s29 }
 0x1df   : > { %5251 = vsyncadd (%p6812_p3), [#allocation19], 4294966016 }
 0x1e0   : > { %5253 = dma.done.wait (%p6802_p6), %s764_s1, 32  }
 0x1e1   : > { %5255 = vsyncadd (%p6802_p6), %s764_s1, 4294967264  ;;  %s774_s28 = scalar_lea.vmem [#allocation23], %s5869_s29  ;;  %p6813_p4 = pmov %p6811_p0 }
 0x1e2   : > { %p6814_p7 = pmov %p6811_p0 }
 0x1e3   : > { %5257 = dma.done.wait (%p6813_p4), [#allocation25], 256  }
 0x1e4   : > { %5259 = vsyncadd (%p6814_p7), [#allocation25], 4294967040  ;;  %v5312_v0 = vmov 0   ;;  %v4690_v1 = vld [vmem:[#allocation9 + $0x4] ss:$16 sps:$4 sm:$0xff]   ;;  %v858_v10 = vld [vmem:[#allocation20] sm:$0xff]  ;;  %v882_v22 = vlaneseq }
 0x1e5   : > { %983 = vmatprep.mubr.bf16.mxu0 %v5312_v0  ;;  %1026 = vmatprep.mubr.bf16.mxu1 %v5312_v0  ;;  %v4692_v2 = vld [vmem:[#allocation9] ss:$16 sps:$4 sm:$0xff]   ;;  %v4693_v3 = vld [vmem:[#allocation9 + $0x24] ss:$16 sps:$4 sm:$0xff]   ;;  %v4696_v5 = vld [vmem:[#allocation9 + $0xc] ss:$16 sps:$4 sm:$0xff]  }
 0x1e6   : > { %951 = vmatprep.subr.bf16.mxu0 %v4690_v1  ;;  %v4695_v4 = vld [vmem:[#allocation9 + $0x20] ss:$16 sps:$4 sm:$0xff]   ;;  %v4699_v7 = vld [vmem:[#allocation9 + $0x8] ss:$16 sps:$4 sm:$0xff]   ;;  %994 = vmatprep.subr.bf16.mxu1 %v4696_v5  ;;  %v4700_v8 = vld [vmem:[#allocation9 + $0x2c] ss:$16 sps:$4 sm:$0xff]  }
 0x1e7   : > { %952 = vmatpush1.bf16.msra.mxu0 %v4692_v2  ;;  %v4698_v6 = vld [vmem:[%s5873_s3] sm:$0xff]   ;;  %995 = vmatpush1.bf16.msra.mxu1 %v4699_v7  ;;  %v859_v11 = vld [vmem:[#allocation20 + $0x8] sm:$0xff]  ;;  %vm947_vm0 = vcmask 261120   ;;  %v860_v13 = vld [vmem:[#allocation20 + $0x10] sm:$0xff]  ;;  %v5951_v23 = vshrl.u32 %v882_v22, 7  ;;  %vm1043_vm1 = vcmask 523264  }
 0x1e8   : > { %953 = vmatprep.subr.bf16.mxu0 %v4693_v3  ;;  %v4702_v9 = vld [vmem:[#allocation9 + $0x28] ss:$16 sps:$4 sm:$0xff]   ;;  %996 = vmatprep.subr.bf16.mxu1 %v4700_v8  ;;  %v5923_v12 = vpack.c.bf16 %v859_v11, %v858_v10  ;;  %v861_v14 = vld [vmem:[#allocation20 + $0x18] sm:$0xff]  ;;  %v863_v17 = vld [vmem:[#allocation20 + $0x28] sm:$0xff]  ;;  %s5313_s27 = smov 64   ;;  %vm5315_vm2 = vmmov 0  }
 0x1e9   : > { %v5925_v15 = vpack.c.bf16 %v861_v14, %v860_v13  ;;  %v862_v16 = vld [vmem:[#allocation20 + $0x20] sm:$0xff]  ;;  %v864_v19 = vld [vmem:[#allocation20 + $0x30] sm:$0xff]  ;;  %v865_v20 = vld [vmem:[#allocation20 + $0x38] sm:$0xff]  ;;  %v884_v24 = vsub.s32 0, %v5951_v23  ;;  %v888_v26 = vsub.s32 1, %v5951_v23  ;;  %v892_v29 = vsub.s32 2, %v5951_v23 }
 0x1ea   : > { %v5932_v18 = vpack.c.bf16 %v863_v17, %v862_v16  ;;  %v5943_v21 = vpack.c.bf16 %v865_v20, %v864_v19  ;;  %v880_v25 = vld [vmem:[#allocation12] sm:$0xf]  ;;  %v896_v39 = vsub.s32 3, %v5951_v23  ;;  %v6010_v49 = vld [vmem:[#allocation14] sm:$0xff]  ;;  %v6014_v50 = vld [vmem:[#allocation14 + $0x8] sm:$0xff]  ;;  %s3618_s10 = sshll.u32 %s5869_s29, 5 }
 0x1eb   : > { %954 = vmatpush1.bf16.msra.mxu0 %v4695_v4  ;;  %997 = vmatpush1.bf16.msra.mxu1 %v4702_v9  ;;  %v885_v27 = vrot.slane %v880_v25, %v884_v24  ;;  %v889_v28 = vrot.slane %v880_v25, %v888_v26  ;;  %v893_v37 = vrot.slane %v880_v25, %v892_v29  ;;  %v4705_v51 = vld [vmem:[#allocation8 + $0x4] ss:$16 sps:$4 sm:$0xff]   ;;  %v4703_v52 = vld [vmem:[#allocation8] ss:$16 sps:$4 sm:$0xff]   ;;  %v6092_v2 = vld [vmem:[#allocation15] sm:$0xff]  ;;  %vm2132_vm3 = vcmask 130048  }
 0x1ec   : > { %4232 = vmatprep.subr.bf16.mxu0 %v5923_v12  ;;  %4248 = vmatprep.subr.bf16.mxu1 %v5923_v12  ;;  %v897_v45 = vrot.slane %v880_v25, %v896_v39  ;;  %v4708_v53 = vld [vmem:[#allocation8 + $0x24] ss:$16 sps:$4 sm:$0xff]   ;;  %v4706_v54 = vld [vmem:[#allocation8 + $0x20] ss:$16 sps:$4 sm:$0xff]   ;;  %s6262_s9 = scalar_lea.vmem [#allocation26], %s3618_s10  ;;  %s4487_s5 = smul.u32 48, %s5869_s29 }
 0x1ed   : > { %v6046_v55 = vld [vmem:[%s5883_s18] sm:$0xff]   ;;  %v6090_v1 = vld [vmem:[#allocation15 + $0x8] sm:$0xff]  ;;  %s6815_s11 = sld [smem:[#allocation43_spill]]  ;;  %s3232_s24 = sshll.u32 %s6262_s9, 4  ;;  %s6590_s24 = int_to_ptr.vmem [resolvable:$true] %s3232_s24 }
 0x1ee   : > { %3628 = vmatmul.mubr.msk.bf16.vlgmr.msra.gmra.mrb[0].mxu0 %vm947_vm0, %v4698_v6  ;;  %3629 = vmatmul.mubr.msk.bf16.vlgmr.msra.gmra.mrb[0].mxu1 %vm947_vm0, %v4698_v6  ;;  %s6357_s8 = scalar_lea.vmem [#allocation27], %s4487_s5  ;;  %s6506_s23 = scalar_lea.vmem [#allocation29], %s4487_s5 }
 0x1ef   : > { %4234 = vmatpush3.bf16.msra.mxu0 %v5923_v12  ;;  %4250 = vmatpush3.bf16.msra.mxu1 %v5923_v12  ;;  %s3250_s30 = sshll.u32 %s6357_s8, 4  ;;  %s6816_s0 = sld [smem:[#allocation62_spill]]  ;;  %s6552_s30 = int_to_ptr.vmem [resolvable:$true] %s3250_s30 }
 0x1f0   : > { %4236 = vmatprep.subr.bf16.mxu0 %v5925_v15  ;;  %4252 = vmatprep.subr.bf16.mxu1 %v5925_v15  ;;  %s3212_s3 = scalar_lea.sflag [#allocation28], %s5880_s2  ;;  %s5116_s20 = scalar_lea.vmem %s6552_s30, 768 }
 0x1f1   : > { %p5117_p13 = scmp.ne.s32.totalorder %s6552_s30, %s5116_s20  ;;  %p6817_p6 = scmp.ne.s32.totalorder %s6777_s17, 0 }
 0x1f2   : > { %s5316_s18 = smov [#allocation27]  }
 0x1f3   : > { %4238 = vmatpush3.bf16.msra.mxu0 %v5925_v15  ;;  %4254 = vmatpush3.bf16.msra.mxu1 %v5925_v15  ;;  %s4488_s13 = smul.u32 768, %s6815_s11  ;;  %p5118_p2 = pnand %p5117_p13, %p6817_p6 }
 0x1f4   : > { %4240 = vmatprep.subr.bf16.mxu0 %v5932_v18  ;;  %4256 = vmatprep.subr.bf16.mxu1 %v5932_v18  ;;  %s5120_s1 = sshll.u32 %s5316_s18, 4  ;;  %s5121_s1 = int_to_ptr.vmem [resolvable:$false] %s5120_s1 }
 0x1f5   : > { %s6559_s4 = scalar_lea.hbm %s6816_s0, %s4488_s13  ;;  %p5119_p8 = pneg %p5118_p2 }
 0x1f6   : > { %p5123_p12 = scmp.lt.s32.totalorder %s6552_s30, %s5121_s1 }
 0x1f7   : > { %4242 = vmatpush3.bf16.msra.mxu0 %v5932_v18  ;;  %4258 = vmatpush3.bf16.msra.mxu1 %v5932_v18 }
 0x1f8   : > { %4244 = vmatprep.subr.bf16.mxu0 %v5943_v21  ;;  %4260 = vmatprep.subr.bf16.mxu1 %v5943_v21 }
 0x1fb   : > { %4246 = vmatpush3.bf16.msra.mxu0 %v5943_v21  ;;  %4262 = vmatpush3.bf16.msra.mxu1 %v5943_v21 }
 0x1fc   : > { %4264 = vmatprep.subr.bf16.mxu0 %v5923_v12  ;;  %4280 = vmatprep.subr.bf16.mxu1 %v5923_v12 }
 0x2c1   : > { %v985_v30 = vpop.f32.mrb[0].mxu0  ;;  %v1028_v38 = vpop.f32.mrb[0].mxu1 }
 0x2c2   : > { %v5960_v31 = vadd.f32 %v985_v30, %v885_v27  ;;  %v987_v32 = vpop.f32.mrb[1].mxu0  ;;  %v1030_v40 = vpop.f32.mrb[1].mxu1  ;;  %v5982_v44 = vadd.f32 %v1028_v38, %v893_v37  ;;  %v4712_v38 = vld [vmem:[#allocation8 + $0xc] ss:$16 sps:$4 sm:$0xff]  }
 0x2c3   : > { %v5962_v33 = vadd.f32 %v987_v32, %v889_v28  ;;  %v989_v34 = vpop.f32.mrb[2].mxu0  ;;  %v1032_v41 = vpop.f32.mrb[2].mxu1  ;;  %v5994_v47 = vadd.f32 %v1030_v40, %v897_v45  ;;  %v4715_v40 = vld [vmem:[#allocation8 + $0x2c] ss:$16 sps:$4 sm:$0xff]  }
 0x2c4   : > { %v5964_v35 = vadd.f32 %v989_v34, %v885_v27  ;;  %v991_v36 = vpop.f32.mrb[3].mxu0  ;;  %1139 = vrot.lane.b32.xlu0 %v5960_v31, %s5313_s27  ;;  %3895 = vmatprep.mubr.msk.f32.mxu0 %vm1043_vm1, %v5960_v31  ;;  %v1034_v43 = vpop.f32.mrb[3].mxu1  ;;  %v5991_v46 = vadd.f32 %v1032_v41, %v893_v37  ;;  %v1041_v7 = vmul.f32 %v6010_v49, %v5960_v31  ;;  %v4710_v37 = vld [vmem:[#allocation8 + $0x8] ss:$16 sps:$4 sm:$0xff]  }
 0x2c5   : > { %1323 = vrot.lane.b32.xlu1 %v5962_v33, %s5313_s27  ;;  %v5977_v42 = vadd.f32 %v991_v36, %v889_v28  ;;  %v6001_v48 = vadd.f32 %v1034_v43, %v897_v45  ;;  %v1234_v16 = vmul.f32 %v6010_v49, %v5962_v33  ;;  %v1418_v30 = vmul.f32 %v6010_v49, %v5982_v44  ;;  %v4713_v41 = vld [vmem:[#allocation8 + $0x28] ss:$16 sps:$4 sm:$0xff]  }
 0x2c6   : > { %3896 = vmatmul.mubr.msk.f32.vlgmr.msra.gmra.mrb[4].mxu0 %vm1043_vm1, %v5964_v35  ;;  %v1042_v4 = vmul.f32 %v6014_v50, %v5964_v35  ;;  %v1419_v25 = vmul.f32 %v6014_v50, %v5991_v46 }
 0x2c7   : > { %4266 = vmatpush3.bf16.msra.mxu0 %v5923_v12  ;;  %3933 = vmatprep.mubr.msk.f32.mxu0 %vm1043_vm1, %v5962_v33  ;;  %v1235_v11 = vmul.f32 %v6014_v50, %v5977_v42  ;;  %v1603_v45 = vmul.f32 %v6014_v50, %v6001_v48 }
 0x2c8   : > { %1141 = vrot.lane.b32.xlu0 %v5964_v35, %s5313_s27  ;;  %4268 = vmatprep.subr.bf16.mxu0 %v5925_v15 }
 0x2c9   : > { %1325 = vrot.lane.b32.xlu1 %v5977_v42, %s5313_s27 }
 0x2cb   : > { %4270 = vmatpush3.bf16.msra.mxu0 %v5925_v15 }
 0x2cc   : > { %1507 = vrot.lane.b32.xlu0 %v5982_v44, %s5313_s27  ;;  %4272 = vmatprep.subr.bf16.mxu0 %v5932_v18 }
 0x2cd   : > { %1509 = vrot.lane.b32.xlu1 %v5991_v46, %s5313_s27 }
 0x2cf   : > { %4274 = vmatpush3.bf16.msra.mxu0 %v5932_v18 }
 0x2d0   : > { %1691 = vrot.lane.b32.xlu0 %v5994_v47, %s5313_s27  ;;  %4276 = vmatprep.subr.bf16.mxu0 %v5943_v21 }
 0x2d1   : > { %1693 = vrot.lane.b32.xlu1 %v6001_v48, %s5313_s27 }
 0x2d3   : > { %4278 = vmatpush3.bf16.msra.mxu0 %v5943_v21 }
 0x2d4   : > { %1131 = vrot.lane.b32.xlu0 %v6010_v49, %s5313_s27  ;;  %4296 = vmatprep.subr.bf16.mxu0 %v5923_v12 }
 0x2d5   : > { %1133 = vrot.lane.b32.xlu1 %v6014_v50, %s5313_s27 }
 0x2d6   : > { %3934 = vmatmul.mubr.msk.f32.vlgmr.msra.gmra.mrb[6].mxu0 %vm1043_vm1, %v5977_v42 }
 0x2d7   : > { %4298 = vmatpush3.bf16.msra.mxu0 %v5923_v12  ;;  %3971 = vmatprep.mubr.msk.f32.mxu0 %vm1043_vm1, %v5982_v44 }
 0x2d8   : > { %4300 = vmatprep.subr.bf16.mxu0 %v5925_v15 }
 0x2db   : > { %4302 = vmatpush3.bf16.msra.mxu0 %v5925_v15 }
 0x2dc   : > { %4304 = vmatprep.subr.bf16.mxu0 %v5932_v18 }
 0x2df   : > { %4306 = vmatpush3.bf16.msra.mxu0 %v5932_v18 }
 0x2e0   : > { %4308 = vmatprep.subr.bf16.mxu0 %v5943_v21 }
 0x2e3   : > { %4310 = vmatpush3.bf16.msra.mxu0 %v5943_v21 }
 0x2e4   : > { %4328 = vmatprep.subr.bf16.mxu0 %v5923_v12 }
 0x2e6   : > { %3972 = vmatmul.mubr.msk.f32.vlgmr.msra.gmra.mrb[8].mxu0 %vm1043_vm1, %v5991_v46 }
 0x2e7   : > { %4330 = vmatpush3.bf16.msra.mxu0 %v5923_v12  ;;  %4009 = vmatprep.mubr.msk.f32.mxu0 %vm1043_vm1, %v5994_v47 }
 0x2e8   : > { %4332 = vmatprep.subr.bf16.mxu0 %v5925_v15 }
 0x2eb   : > { %4334 = vmatpush3.bf16.msra.mxu0 %v5925_v15 }
 0x2ec   : > { %4336 = vmatprep.subr.bf16.mxu0 %v5932_v18 }
 0x2ef   : > { %4338 = vmatpush3.bf16.msra.mxu0 %v5932_v18 }
 0x2f0   : > { %4340 = vmatprep.subr.bf16.mxu0 %v5943_v21 }
 0x2f3   : > { %4342 = vmatpush3.bf16.msra.mxu0 %v5943_v21 }
 0x2f4   : > { %1883 = vmatprep.subr.bf16.mxu0 %v4705_v51 }
 0x2f6   : > { %4010 = vmatmul.mubr.msk.f32.vlgmr.msra.gmra.mrb[10].mxu0 %vm1043_vm1, %v6001_v48 }
 0x2f7   : > { %1884 = vmatpush1.bf16.msra.mxu0 %v4703_v52  ;;  %1915 = vmatprep.mubr.bf16.mxu0 %v5312_v0 }
 0x2f8   : > { %1885 = vmatprep.subr.bf16.mxu0 %v4708_v53  ;;  %v1602_v53 = vmul.f32 %v6010_v49, %v5994_v47 }
 0x2fb   : > { %1886 = vmatpush1.bf16.msra.mxu0 %v4706_v54 }
 0x2fc   : > { %4360 = vmatprep.subr.bf16.mxu0 %v5923_v12 }
 0x2fe   : > { %3655 = vmatmul.mubr.msk.bf16.vlgmr.msra.gmra.mrb[12].mxu0 %vm947_vm0, %v6046_v55 }
 0x2ff   : > { %4362 = vmatpush3.bf16.msra.mxu0 %v5923_v12 }
 0x300   : > { %4364 = vmatprep.subr.bf16.mxu0 %v5925_v15 }
 0x303   : > { %4366 = vmatpush3.bf16.msra.mxu0 %v5925_v15 }
 0x304   : > { %4368 = vmatprep.subr.bf16.mxu0 %v5932_v18 }
 0x307   : > { %4370 = vmatpush3.bf16.msra.mxu0 %v5932_v18 }
 0x308   : > { %4372 = vmatprep.subr.bf16.mxu0 %v5943_v21 }
 0x30b   : > { %4374 = vmatpush3.bf16.msra.mxu0 %v5943_v21 }
 0x336   : > { %v1140_v56 = vpop.permute.xlu0 %1139 }
 0x337   : > { %3914 = vmatprep.mubr.msk.f32.mxu1 %vm1043_vm1, %v1140_v56  ;;  %v1324_v58 = vpop.permute.xlu1 %1323  ;;  %v1812_v56 = vld [vmem:[#allocation11] sm:$0xf] }
 0x33a   : > { %v1142_v57 = vpop.permute.xlu0 %1141 }
 0x33b   : > { %3915 = vmatmul.mubr.msk.f32.vlgmr.msra.gmra.mrb[4].mxu1 %vm1043_vm1, %v1142_v57  ;;  %v1326_v59 = vpop.permute.xlu1 %1325 }
 0x33c   : > { %4282 = vmatpush3.bf16.msra.mxu1 %v5923_v12  ;;  %3952 = vmatprep.mubr.msk.f32.mxu1 %vm1043_vm1, %v1324_v58 }
 0x33d   : > { %4284 = vmatprep.subr.bf16.mxu1 %v5925_v15 }
 0x33e   : > { %v1508_v60 = vpop.permute.xlu0 %1507 }
 0x33f   : > { %v1510_v61 = vpop.permute.xlu1 %1509 }
 0x340   : > { %4286 = vmatpush3.bf16.msra.mxu1 %v5925_v15 }
 0x341   : > { %4288 = vmatprep.subr.bf16.mxu1 %v5932_v18 }
 0x342   : > { %v1692_v62 = vpop.permute.xlu0 %1691 }
 0x343   : > { %v1694_v63 = vpop.permute.xlu1 %1693 }
 0x344   : > { %4290 = vmatpush3.bf16.msra.mxu1 %v5932_v18 }
 0x345   : > { %4292 = vmatprep.subr.bf16.mxu1 %v5943_v21 }
 0x348   : > { %4294 = vmatpush3.bf16.msra.mxu1 %v5943_v21 }
 0x349   : > { %4312 = vmatprep.subr.bf16.mxu1 %v5923_v12 }
 0x34b   : > { %3953 = vmatmul.mubr.msk.f32.vlgmr.msra.gmra.mrb[6].mxu1 %vm1043_vm1, %v1326_v59  ;;  %v1817_v59 = vrot.slane %v1812_v56, %v884_v24  ;;  %v5314_v24 = vmov 0.0  }
 0x34c   : > { %4314 = vmatpush3.bf16.msra.mxu1 %v5923_v12  ;;  %3990 = vmatprep.mubr.msk.f32.mxu1 %vm1043_vm1, %v1508_v60 }
 0x34d   : > { %4316 = vmatprep.subr.bf16.mxu1 %v5925_v15  ;;  %4075 = vmatprep.subr.bf16.mxu0 %v5314_v24 }
 0x350   : > { %4318 = vmatpush3.bf16.msra.mxu1 %v5925_v15 }
 0x351   : > { %4320 = vmatprep.subr.bf16.mxu1 %v5932_v18 }
 0x354   : > { %4322 = vmatpush3.bf16.msra.mxu1 %v5932_v18 }
 0x355   : > { %4324 = vmatprep.subr.bf16.mxu1 %v5943_v21 }
 0x358   : > { %4326 = vmatpush3.bf16.msra.mxu1 %v5943_v21 }
 0x359   : > { %4344 = vmatprep.subr.bf16.mxu1 %v5923_v12 }
 0x35b   : > { %3991 = vmatmul.mubr.msk.f32.vlgmr.msra.gmra.mrb[8].mxu1 %vm1043_vm1, %v1510_v61 }
 0x35c   : > { %4346 = vmatpush3.bf16.msra.mxu1 %v5923_v12  ;;  %4028 = vmatprep.mubr.msk.f32.mxu1 %vm1043_vm1, %v1692_v62 }
 0x35d   : > { %4348 = vmatprep.subr.bf16.mxu1 %v5925_v15 }
 0x360   : > { %4350 = vmatpush3.bf16.msra.mxu1 %v5925_v15 }
 0x361   : > { %4352 = vmatprep.subr.bf16.mxu1 %v5932_v18 }
 0x364   : > { %4354 = vmatpush3.bf16.msra.mxu1 %v5932_v18 }
 0x365   : > { %4356 = vmatprep.subr.bf16.mxu1 %v5943_v21 }
 0x368   : > { %4358 = vmatpush3.bf16.msra.mxu1 %v5943_v21 }
 0x369   : > { %1926 = vmatprep.subr.bf16.mxu1 %v4712_v38 }
 0x36b   : > { %4029 = vmatmul.mubr.msk.f32.vlgmr.msra.gmra.mrb[10].mxu1 %vm1043_vm1, %v1694_v63 }
 0x36c   : > { %1958 = vmatprep.mubr.bf16.mxu1 %v5312_v0  ;;  %1927 = vmatpush1.bf16.msra.mxu1 %v4710_v37 }
 0x36d   : > { %1928 = vmatprep.subr.bf16.mxu1 %v4715_v40 }
 0x370   : > { %1929 = vmatpush1.bf16.msra.mxu1 %v4713_v41 }
 0x371   : > { %4050 = vmatprep.subr.bf16.mxu1 %v5314_v24 }
 0x373   : > { %3656 = vmatmul.mubr.msk.bf16.vlgmr.msra.gmra.mrb[12].mxu1 %vm947_vm0, %v6046_v55  ;;  %v6144_v55 = vrot.slane %v1812_v56, %v888_v26 }
 0x374   : > { %4052 = vmatprep.mubr.msk.bf16.mxu1 %vm5315_vm2, %v5314_v24 }
 0x399   : > { %v3897_v3 = vpop.f32.mrb[4].mxu0 }
 0x39a   : > { %v1126_v5 = vmul.f32 %v3897_v3, %v6090_v1  ;;  %v1116_v6 = vpop.f32.mrb[5].mxu0 }
 0x39b   : > { %v1125_v8 = vmul.f32 %v1116_v6, %v6092_v2 }
 0x39c   : > { %v6100_v9 = vadd.f32 %v1126_v5, %v1042_v4 }
 0x39d   : > { %v6102_v10 = vadd.f32 %v1125_v8, %v1041_v7  ;;  %v6165_v7 = vld [vmem:[#allocation17 + $0x8] sm:$0xff]  ;;  %v6169_v8 = vld [vmem:[#allocation17] sm:$0xff] }
 0x3a9   : > { %v3935_v0 = vpop.f32.mrb[6].mxu0 }
 0x3aa   : > { %v1318_v13 = vmul.f32 %v3935_v0, %v6090_v1  ;;  %v1308_v14 = vpop.f32.mrb[7].mxu0 }
 0x3ab   : > { %v1317_v17 = vmul.f32 %v1308_v14, %v6092_v2 }
 0x3ac   : > { %v6110_v19 = vadd.f32 %v1318_v13, %v1235_v11 }
 0x3ad   : > { %v6112_v20 = vadd.f32 %v1317_v17, %v1234_v16 }
 0x3b9   : > { %v3973_v22 = vpop.f32.mrb[8].mxu0 }
 0x3ba   : > { %v1502_v27 = vmul.f32 %v3973_v22, %v6090_v1  ;;  %v1492_v28 = vpop.f32.mrb[9].mxu0  ;;  %v6189_v22 = vpop.permute.xlu1 %1133 }
 0x3bb   : > { %v1501_v32 = vmul.f32 %v1492_v28, %v6092_v2 }
 0x3bc   : > { %v6120_v34 = vadd.f32 %v1502_v27, %v1419_v25  ;;  %v6191_v25 = vpop.permute.xlu0 %1131  ;;  %v1138_v27 = vmul.f32 %v6189_v22, %v5964_v35  ;;  %v6205_v35 = vrot.slane %v1812_v56, %v892_v29  ;;  %v6223_v29 = vld [vmem:[#allocation18] sm:$0xff] }
 0x3bd   : > { %v6122_v36 = vadd.f32 %v1501_v32, %v1418_v30  ;;  %v1137_v30 = vmul.f32 %v6191_v25, %v5960_v31 }
 0x3c9   : > { %v4011_v43 = vpop.f32.mrb[10].mxu0 }
 0x3ca   : > { %v1686_v51 = vmul.f32 %v4011_v43, %v6090_v1  ;;  %v1676_v52 = vpop.f32.mrb[11].mxu0 }
 0x3cb   : > { %v1685_v54 = vmul.f32 %v1676_v52, %v6092_v2 }
 0x3cc   : > { %v6132_v57 = vadd.f32 %v1686_v51, %v1603_v45  ;;  %v6211_v51 = vrot.slane %v1812_v56, %v896_v39 }
 0x3cd   : > { %v6134_v58 = vadd.f32 %v1685_v54, %v1602_v53 }
 0x3d1   : > { %v1917_v50 = vpop.f32.mrb[12].mxu0 }
 0x3d2   : > { %v6138_v60 = vadd.f32 %v1917_v50, %v1817_v59  ;;  %v6140_v61 = vpop.f32.mrb[13].mxu0 }
 0x3d3   : > { %v1921_v49 = vpop.f32.mrb[14].mxu0 }
 0x3d4   : > { %v6146_v62 = vadd.f32 %v1921_v49, %v1817_v59  ;;  %v1923_v63 = vpop.f32.mrb[15].mxu0  ;;  %4047 = vmatprep.mubr.msk.f32.mxu0 %vm1043_vm1, %v6138_v60  ;;  %v6221_v59 = vld [vmem:[#allocation18 + $0x8] sm:$0xff]  ;;  %v1991_v49 = vmul.f32 %v6169_v8, %v6138_v60 }
 0x3d5   : > { %v6151_v3 = vadd.f32 %v1923_v63, %v6144_v55 }
 0x3d6   : > { %4048 = vmatmul.mubr.msk.f32.vlgmr.msra.gmra.mrb[16].mxu0 %vm1043_vm1, %v6146_v62  ;;  %v1992_v23 = vmul.f32 %v6165_v7, %v6146_v62 }
 0x3d7   : > { %4077 = vmatprep.mubr.msk.bf16.mxu0 %vm5315_vm2, %v5314_v24 }
 0x40e   : > { %v3916_v26 = vpop.f32.mrb[4].mxu1 }
 0x40f   : > { %v1223_v4 = vmul.f32 %v3916_v26, %v6090_v1  ;;  %v1213_v5 = vpop.f32.mrb[5].mxu1 }
 0x410   : > { %v1222_v6 = vmul.f32 %v1213_v5, %v6092_v2 }
 0x411   : > { %1228 = vrot.lane.b32.xlu1 %v1223_v4, %s5313_s27 }
 0x412   : > { %1226 = vrot.lane.b32.xlu0 %v1222_v6, %s5313_s27 }
 0x415   : > { %2147 = vrot.lane.b32.xlu1 %v6146_v62, %s5313_s27 }
 0x416   : > { %2145 = vrot.lane.b32.xlu0 %v6138_v60, %s5313_s27 }
 0x419   : > { %2139 = vrot.lane.b32.xlu1 %v6165_v7, %s5313_s27 }
 0x41a   : > { %2137 = vrot.lane.b32.xlu0 %v6169_v8, %s5313_s27 }
 0x41e   : > { %v6173_v0 = vpop.f32.mrb[6].mxu1 }
 0x41f   : > { %v6175_v11 = vpop.f32.mrb[7].mxu1 }
 0x42e   : > { %v6177_v13 = vpop.f32.mrb[8].mxu1 }
 0x42f   : > { %v6179_v14 = vpop.f32.mrb[9].mxu1 }
 0x43e   : > { %v6185_v16 = vpop.f32.mrb[10].mxu1 }
 0x43f   : > { %v6187_v17 = vpop.f32.mrb[11].mxu1 }
 0x446   : > { %v6207_v31 = vpop.f32.mrb[12].mxu1 }
 0x483   : > { %v1229_v28 = vpop.permute.xlu1 %1228 }
 0x484   : > { %v1233_v32 = vadd.f32 %v1229_v28, %v1138_v27  ;;  %v1227_v37 = vpop.permute.xlu0 %1226  ;;  %v6246_v28 = vld [vmem:[%s774_s28] ss:$0 sm:$0xff] }
 0x485   : > { %v1232_v38 = vadd.f32 %v1227_v37, %v1137_v30  ;;  %v1987_v30 = vld [vmem:[#allocation24] sm:$0xff]  ;;  %v1988_v37 = vld [vmem:[#allocation24 + $0x8] sm:$0xff] }
 0x486   : > { %v1787_v40 = vsel %vm1043_vm1, %v6100_v9, %v1233_v32  ;;  %v6213_v9 = vpop.f32.mrb[13].mxu1  ;;  %v6250_v32 = vld [vmem:[%s766_s16] ss:$0 sm:$0xff]  ;;  %s5122_s16 = scalar_lea.vmem %s5121_s1, 1536 }
 0x487   : > { %v1786_v41 = vsel %vm1043_vm1, %v6102_v10, %v1232_v38  ;;  %v1964_v52 = vpop.f32.mrb[14].mxu1  ;;  %v2148_v27 = vpop.permute.xlu1 %2147  ;;  %v6254_v38 = vadd.f32 %v6246_v28, %v1987_v30  ;;  %p5124_p5 = scmp.lt.s32.totalorder %s5122_s16, %s5116_s20 }
 0x488   : > { %v1794_v43 = vpack.c.bf16 %v1787_v40, %v1786_v41  ;;  %v6216_v10 = vadd.f32 %v1964_v52, %v6205_v35  ;;  %v1966_v53 = vpop.f32.mrb[15].mxu1  ;;  %v2146_v6 = vpop.permute.xlu0 %2145  ;;  %v6258_v52 = vadd.f32 %v6246_v28, %v1988_v37 }
 0x489   : > { %v6219_v54 = vadd.f32 %v1966_v53, %v6211_v51  ;;  %p5125_p1 = por %p5124_p5, %p5123_p12 }
 0x48a   : > { %v2085_v45 = vsel %vm1043_vm1, %v1794_v43, 0 }
 0x48b   : > { %4051 = vmatpush3.bf16.xpose.msra.mxu1 %v2085_v45  ;;  %p5126_p11 = pnand %p5125_p1, %p5119_p8 }
 0x48c   : > { %4376 = vmatprep.subr.bf16.mxu1 %v5923_v12  ;;  %v6285_v30 = vpop.permute.xlu0 %2137 }
 0x4a9   : > { %v4049_v50 = vpop.f32.mrb[16].mxu0 }
 0x4aa   : > { %v2076_v39 = vmul.f32 %v4049_v50, %v6221_v59  ;;  %v2066_v56 = vpop.f32.mrb[17].mxu0 }
 0x4ab   : > { %v2075_v63 = vmul.f32 %v2066_v56, %v6223_v29 }
 0x4ac   : > { %v2078_v26 = vadd.f32 %v2076_v39, %v1992_v23 }
 0x4ad   : > { %v2077_v4 = vadd.f32 %v2075_v63, %v1991_v49 }
 0x4af   : > { %v2080_v5 = vpack.c.bf16 %v2078_v26, %v2077_v4 }
 0x4b1   : > { %4053 = vmatmul.mubr.msk.bf16.vlgmr.msra.gmra.mrb[16].mxu1 %vm1043_vm1, %v2080_v5  ;;  %v1406_v5 = vmul.f32 %v6175_v11, %v6092_v2  ;;  %v2143_v11 = vmul.f32 %v6285_v30, %v6138_v60 }
 0x4b2   : > { %4378 = vmatpush3.bf16.msra.mxu1 %v5923_v12  ;;  %4072 = vmatprep.mubr.msk.f32.mxu1 %vm1043_vm1, %v2146_v6  ;;  %v6279_v6 = vadd.f32 %v6140_v61, %v6144_v55 }
 0x4b3   : > { %4380 = vmatprep.subr.bf16.mxu1 %v5925_v15 }
 0x4b6   : > { %4382 = vmatpush3.bf16.msra.mxu1 %v5925_v15 }
 0x4b7   : > { %4384 = vmatprep.subr.bf16.mxu1 %v5932_v18 }
 0x4ba   : > { %4386 = vmatpush3.bf16.msra.mxu1 %v5932_v18 }
 0x4bb   : > { %4388 = vmatprep.subr.bf16.mxu1 %v5943_v21 }
 0x4be   : > { %4390 = vmatpush3.bf16.msra.mxu1 %v5943_v21 }
 0x4bf   : > { %4100 = vmatprep.subr.bf16.mxu1 %v5314_v24 }
 0x4c1   : > { %4073 = vmatmul.mubr.msk.f32.vlgmr.msra.gmra.mrb[20].mxu1 %vm1043_vm1, %v2148_v27  ;;  %v6283_v27 = vpop.permute.xlu1 %2139 }
 0x4c2   : > { %4102 = vmatprep.mubr.msk.bf16.mxu1 %vm5315_vm2, %v5314_v24  ;;  %v2144_v37 = vmul.f32 %v6283_v27, %v6146_v62 }
 0x584   : > { %v2121_v40 = vpop.f32.mrb[16].mxu1 }
 0x585   : > { %v2128_v41 = vmul.f32 %v6250_v32, %v2121_v40  ;;  %v4054_v45 = vpop.f32.mrb[17].mxu1 }
 0x586   : > { %v2124_v53 = vpop.f32.mrb[18].mxu1 }
 0x587   : > { %v2130_v50 = vadd.f32 %v2128_v41, %v6254_v38  ;;  %v2129_v23 = vmul.f32 %v6250_v32, %v2124_v53  ;;  %v4055_v39 = vpop.f32.mrb[19].mxu1 }
 0x588   : > { %v1322_v39 = vmul.f32 %v6189_v22, %v5977_v42 }
 0x589   : > { %2133 = vst.msk [vmem:[%s6262_s9] sm:$0xff] %vm2132_vm3, %v2130_v50  ;;  %v2131_v56 = vadd.f32 %v2129_v23, %v6258_v52  ;;  %v1407_v50 = vmul.f32 %v6173_v0, %v6090_v1  ;;  %v1321_v23 = vmul.f32 %v6191_v25, %v5962_v33 }
 0x58b   : > { %2134 = vst.msk [vmem:[%s6262_s9 + $0x8] sm:$0xff] %vm2132_vm3, %v2131_v56 }
 0x594   : > { %v4074_v49 = vpop.f32.mrb[20].mxu1 }
 0x595   : > { %v2229_v63 = vmul.f32 %v4074_v49, %v6221_v59  ;;  %v2219_v26 = vpop.f32.mrb[21].mxu1 }
 0x596   : > { %v2228_v4 = vmul.f32 %v2219_v26, %v6223_v29 }
 0x597   : > { %2234 = vrot.lane.b32.xlu1 %v2229_v63, %s5313_s27 }
 0x598   : > { %2232 = vrot.lane.b32.xlu0 %v2228_v4, %s5313_s27 }
 0x59c   : > { %2246 = vrot.lane.b32.xlu0 %v1794_v43, %s5313_s27 }
 0x5a0   : > { %1410 = vrot.lane.b32.xlu0 %v1406_v5, %s5313_s27 }
 0x5a4   : > { %2446 = vrot.lane.b32.xlu0 %v6279_v6, %s5313_s27 }
 0x609   : > { %v2235_v43 = vpop.permute.xlu1 %2234 }
 0x60a   : > { %v2239_v40 = vadd.f32 %v2235_v43, %v2144_v37  ;;  %v2233_v41 = vpop.permute.xlu0 %2232 }
 0x60b   : > { %v2238_v45 = vadd.f32 %v2233_v41, %v2143_v11 }
 0x60d   : > { %v2241_v53 = vpack.c.bf16 %v2239_v40, %v2238_v45  ;;  %v2303_v45 = vmul.f32 %v6165_v7, %v6151_v3 }
 0x60e   : > { %v2247_v61 = vpop.permute.xlu0 %2246 }
 0x60f   : > { %v2252_v55 = vsel %vm1043_vm1, %v2247_v61, 0  ;;  %2243 = vrot.lane.b32.xlu1 %v2241_v53, %s5313_s27 }
 0x610   : > { %4076 = vmatpush3.bf16.xpose.msra.mxu0 %v2252_v55  ;;  %v2302_v55 = vmul.f32 %v6169_v8, %v6279_v6 }
 0x611   : > { %4392 = vmatprep.subr.bf16.mxu0 %v5923_v12 }
 0x612   : > { %v1411_v60 = vpop.permute.xlu0 %1410 }
 0x613   : > { %1412 = vrot.lane.b32.xlu1 %v1407_v50, %s5313_s27  ;;  %v1416_v0 = vadd.f32 %v1411_v60, %v1321_v23 }
 0x615   : > { %v1788_v33 = vsel %vm1043_vm1, %v6112_v20, %v1416_v0 }
 0x616   : > { %v2447_v23 = vpop.permute.xlu0 %2446 }
 0x617   : > { %2448 = vrot.lane.b32.xlu1 %v6151_v3, %s5313_s27 }
 0x681   : > { %v2244_v62 = vpop.permute.xlu1 %2243 }
 0x682   : > { %4078 = vmatmul.mubr.msk.bf16.vlgmr.msra.gmra.mrb[20].mxu0 %vm1043_vm1, %v2244_v62 }
 0x683   : > { %4394 = vmatpush3.bf16.msra.mxu0 %v5923_v12  ;;  %4097 = vmatprep.mubr.msk.f32.mxu0 %vm1043_vm1, %v6279_v6 }
 0x684   : > { %4396 = vmatprep.subr.bf16.mxu0 %v5925_v15 }
 0x685   : > { %v1413_v56 = vpop.permute.xlu1 %1412 }
 0x686   : > { %v1417_v49 = vadd.f32 %v1413_v56, %v1322_v39 }
 0x687   : > { %4398 = vmatpush3.bf16.msra.mxu0 %v5925_v15 }
 0x688   : > { %v1789_v63 = vsel %vm1043_vm1, %v6110_v19, %v1417_v49  ;;  %4400 = vmatprep.subr.bf16.mxu0 %v5932_v18 }
 0x689   : > { %v1795_v26 = vpack.c.bf16 %v1789_v63, %v1788_v33 }
 0x68b   : > { %4402 = vmatpush3.bf16.msra.mxu0 %v5932_v18  ;;  %v2395_v42 = vsel %vm1043_vm1, %v1795_v26, 0 }
 0x68c   : > { %4101 = vmatpush3.bf16.xpose.msra.mxu1 %v2395_v42  ;;  %4404 = vmatprep.subr.bf16.mxu0 %v5943_v21 }
 0x68d   : > { %4408 = vmatprep.subr.bf16.mxu1 %v5923_v12 }
 0x68f   : > { %4406 = vmatpush3.bf16.msra.mxu0 %v5943_v21 }
 0x690   : > { %4125 = vmatprep.subr.bf16.mxu0 %v5314_v24 }
 0x692   : > { %4098 = vmatmul.mubr.msk.f32.vlgmr.msra.gmra.mrb[18].mxu0 %vm1043_vm1, %v6151_v3 }
 0x693   : > { %4127 = vmatprep.mubr.msk.bf16.mxu0 %vm5315_vm2, %v5314_v24 }
 0x755   : > { %v2288_v19 = vpop.f32.mrb[20].mxu0 }
 0x756   : > { %v2295_v20 = vmul.f32 %v6250_v32, %v2288_v19  ;;  %v4079_v4 = vpop.f32.mrb[21].mxu0 }
 0x757   : > { %v2291_v5 = vpop.f32.mrb[22].mxu0 }
 0x758   : > { %v2297_v37 = vadd.f32 %v2295_v20, %v6254_v38  ;;  %v2296_v43 = vmul.f32 %v6250_v32, %v2291_v5  ;;  %v4080_v11 = vpop.f32.mrb[23].mxu0 }
 0x759   : > { %v6374_v11 = vadd.f32 %v6207_v31, %v6205_v35  ;;  %v1591_v35 = vmul.f32 %v6177_v13, %v6090_v1 }
 0x75a   : > { %3665 = vst.msk [vmem:[%s6262_s9 + $0x10] sm:$0xff] %vm2132_vm3, %v2297_v37  ;;  %v2298_v40 = vadd.f32 %v2296_v43, %v6258_v52  ;;  %v2449_v52 = vpop.permute.xlu1 %2448  ;;  %v1590_v43 = vmul.f32 %v6179_v14, %v6092_v2 }
 0x75c   : > { %3666 = vst.msk [vmem:[%s6262_s9 + $0x18] sm:$0xff] %vm2132_vm3, %v2298_v40  ;;  %v2445_v40 = vmul.f32 %v6283_v27, %v6151_v3 }
 0x765   : > { %v4099_v41 = vpop.f32.mrb[18].mxu0 }
 0x766   : > { %v2386_v53 = vmul.f32 %v4099_v41, %v6221_v59  ;;  %v2376_v61 = vpop.f32.mrb[19].mxu0 }
 0x767   : > { %v2385_v38 = vmul.f32 %v2376_v61, %v6223_v29 }
 0x768   : > { %v2388_v50 = vadd.f32 %v2386_v53, %v2303_v45  ;;  %v2444_v45 = vmul.f32 %v6285_v30, %v6279_v6  ;;  %v1505_v6 = vmul.f32 %v6191_v25, %v5982_v44 }
 0x769   : > { %v2387_v60 = vadd.f32 %v2385_v38, %v2302_v55 }
 0x76b   : > { %v2390_v62 = vpack.c.bf16 %v2388_v50, %v2387_v60  ;;  %v1506_v50 = vmul.f32 %v6189_v22, %v5991_v46 }
 0x76d   : > { %4103 = vmatmul.mubr.msk.bf16.vlgmr.msra.gmra.mrb[24].mxu1 %vm1043_vm1, %v2390_v62 }
 0x76e   : > { %4410 = vmatpush3.bf16.msra.mxu1 %v5923_v12  ;;  %4122 = vmatprep.mubr.msk.f32.mxu1 %vm1043_vm1, %v2447_v23 }
 0x76f   : > { %4412 = vmatprep.subr.bf16.mxu1 %v5925_v15 }
 0x772   : > { %4414 = vmatpush3.bf16.msra.mxu1 %v5925_v15 }
 0x773   : > { %4416 = vmatprep.subr.bf16.mxu1 %v5932_v18 }
 0x776   : > { %4418 = vmatpush3.bf16.msra.mxu1 %v5932_v18 }
 0x777   : > { %4420 = vmatprep.subr.bf16.mxu1 %v5943_v21 }
 0x77a   : > { %4422 = vmatpush3.bf16.msra.mxu1 %v5943_v21 }
 0x77b   : > { %4150 = vmatprep.subr.bf16.mxu1 %v5314_v24 }
 0x77d   : > { %4123 = vmatmul.mubr.msk.f32.vlgmr.msra.gmra.mrb[22].mxu1 %vm1043_vm1, %v2449_v52 }
 0x77e   : > { %4152 = vmatprep.mubr.msk.bf16.mxu1 %vm5315_vm2, %v5314_v24 }
 0x840   : > { %v2431_v0 = vpop.f32.mrb[24].mxu1 }
 0x841   : > { %v2438_v39 = vmul.f32 %v6250_v32, %v2431_v0  ;;  %v4104_v56 = vpop.f32.mrb[25].mxu1 }
 0x842   : > { %v2434_v49 = vpop.f32.mrb[26].mxu1 }
 0x843   : > { %v2440_v33 = vadd.f32 %v6246_v28, %v2438_v39  ;;  %v2439_v63 = vmul.f32 %v6250_v32, %v2434_v49  ;;  %v4105_v42 = vpop.f32.mrb[27].mxu1 }
 0x845   : > { %2442 = vst.msk [vmem:[%s6357_s8] sm:$0xff] %vm2132_vm3, %v2440_v33  ;;  %v2441_v19 = vadd.f32 %v6246_v28, %v2439_v63 }
 0x847   : > { %2443 = vst.msk [vmem:[%s6357_s8 + $0x8] sm:$0xff] %vm2132_vm3, %v2441_v19  ;;  %v2604_v19 = vmul.f32 %v6165_v7, %v6216_v10 }
 0x850   : > { %v4124_v20 = vpop.f32.mrb[22].mxu1 }
 0x851   : > { %v2530_v4 = vmul.f32 %v4124_v20, %v6221_v59  ;;  %v2520_v5 = vpop.f32.mrb[23].mxu1 }
 0x852   : > { %v2529_v37 = vmul.f32 %v2520_v5, %v6223_v29  ;;  %v2603_v5 = vmul.f32 %v6169_v8, %v6374_v11 }
 0x853   : > { %2535 = vrot.lane.b32.xlu1 %v2530_v4, %s5313_s27 }
 0x854   : > { %2533 = vrot.lane.b32.xlu0 %v2529_v37, %s5313_s27 }
 0x858   : > { %2547 = vrot.lane.b32.xlu0 %v1795_v26, %s5313_s27 }
 0x85c   : > { %1594 = vrot.lane.b32.xlu0 %v1590_v43, %s5313_s27 }
 0x860   : > { %2748 = vrot.lane.b32.xlu0 %v6374_v11, %s5313_s27 }
 0x8c5   : > { %v2536_v41 = vpop.permute.xlu1 %2535 }
 0x8c6   : > { %v2540_v26 = vadd.f32 %v2536_v41, %v2445_v40  ;;  %v2534_v53 = vpop.permute.xlu0 %2533 }
 0x8c7   : > { %v2539_v61 = vadd.f32 %v2534_v53, %v2444_v45 }
 0x8c9   : > { %v2542_v14 = vpack.c.bf16 %v2540_v26, %v2539_v61 }
 0x8ca   : > { %v2548_v55 = vpop.permute.xlu0 %2547 }
 0x8cb   : > { %v2553_v38 = vsel %vm1043_vm1, %v2548_v55, 0  ;;  %2544 = vrot.lane.b32.xlu1 %v2542_v14, %s5313_s27 }
 0x8cc   : > { %4126 = vmatpush3.bf16.xpose.msra.mxu0 %v2553_v38 }
 0x8cd   : > { %4424 = vmatprep.subr.bf16.mxu0 %v5923_v12 }
 0x8ce   : > { %v1595_v3 = vpop.permute.xlu0 %1594 }
 0x8cf   : > { %1596 = vrot.lane.b32.xlu1 %v1591_v35, %s5313_s27  ;;  %v1600_v13 = vadd.f32 %v1595_v3, %v1505_v6 }
 0x8d1   : > { %v1790_v44 = vsel %vm1043_vm1, %v6122_v36, %v1600_v13 }
 0x8d2   : > { %v2749_v45 = vpop.permute.xlu0 %2748 }
 0x8d3   : > { %2750 = vrot.lane.b32.xlu1 %v6216_v10, %s5313_s27 }
 0x93d   : > { %v2545_v31 = vpop.permute.xlu1 %2544 }
 0x93e   : > { %4128 = vmatmul.mubr.msk.bf16.vlgmr.msra.gmra.mrb[24].mxu0 %vm1043_vm1, %v2545_v31 }
 0x93f   : > { %4426 = vmatpush3.bf16.msra.mxu0 %v5923_v12  ;;  %4147 = vmatprep.mubr.msk.f32.mxu0 %vm1043_vm1, %v6374_v11 }
 0x940   : > { %4428 = vmatprep.subr.bf16.mxu0 %v5925_v15 }
 0x941   : > { %v1597_v60 = vpop.permute.xlu1 %1596 }
 0x942   : > { %v1601_v62 = vadd.f32 %v1597_v60, %v1506_v50 }
 0x943   : > { %4430 = vmatpush3.bf16.msra.mxu0 %v5925_v15 }
 0x944   : > { %v1791_v23 = vsel %vm1043_vm1, %v6120_v34, %v1601_v62  ;;  %4432 = vmatprep.subr.bf16.mxu0 %v5932_v18  ;;  %v1774_v62 = vmul.f32 %v6187_v17, %v6092_v2 }
 0x945   : > { %v1796_v52 = vpack.c.bf16 %v1791_v23, %v1790_v44  ;;  %v2751_v26 = vpop.permute.xlu1 %2750  ;;  %v6460_v44 = vadd.f32 %v6213_v9, %v6211_v51  ;;  %v2747_v23 = vmul.f32 %v6283_v27, %v6216_v10  ;;  %v1775_v51 = vmul.f32 %v6185_v16, %v6090_v1 }
 0x946   : > { %v1690_v16 = vmul.f32 %v6189_v22, %v6001_v48 }
 0x947   : > { %4434 = vmatpush3.bf16.msra.mxu0 %v5932_v18  ;;  %v2696_v46 = vsel %vm1043_vm1, %v1796_v52, 0 }
 0x948   : > { %4151 = vmatpush3.bf16.xpose.msra.mxu1 %v2696_v46  ;;  %4436 = vmatprep.subr.bf16.mxu0 %v5943_v21 }
 0x949   : > { %4440 = vmatprep.subr.bf16.mxu1 %v5923_v12 }
 0x94b   : > { %4438 = vmatpush3.bf16.msra.mxu0 %v5943_v21 }
 0x94c   : > { %4175 = vmatprep.subr.bf16.mxu0 %v5314_v24 }
 0x94e   : > { %4148 = vmatmul.mubr.msk.f32.vlgmr.msra.gmra.mrb[28].mxu0 %vm1043_vm1, %v6216_v10 }
 0x94f   : > { %4177 = vmatprep.mubr.msk.bf16.mxu0 %vm5315_vm2, %v5314_v24 }
 0xa11   : > { %v2589_v34 = vpop.f32.mrb[24].mxu0 }
 0xa12   : > { %v2596_v36 = vmul.f32 %v6250_v32, %v2589_v34  ;;  %v4129_v0 = vpop.f32.mrb[25].mxu0  ;;  %v2746_v34 = vmul.f32 %v6285_v30, %v6374_v11  ;;  %v1689_v11 = vmul.f32 %v6191_v25, %v5994_v47 }
 0xa13   : > { %v2592_v39 = vpop.f32.mrb[26].mxu0 }
 0xa14   : > { %v2598_v56 = vadd.f32 %v6246_v28, %v2596_v36  ;;  %v2597_v49 = vmul.f32 %v6250_v32, %v2592_v39  ;;  %v4130_v33 = vpop.f32.mrb[27].mxu0 }
 0xa16   : > { %3673 = vst.msk [vmem:[%s6357_s8 + $0x10] sm:$0xff] %vm2132_vm3, %v2598_v56  ;;  %v2599_v63 = vadd.f32 %v6246_v28, %v2597_v49 }
 0xa18   : > { %3674 = vst.msk [vmem:[%s6357_s8 + $0x18] sm:$0xff] %vm2132_vm3, %v2599_v63 }
 0xa21   : > { %v4149_v42 = vpop.f32.mrb[28].mxu0 }
 0xa22   : > { %v2687_v20 = vmul.f32 %v4149_v42, %v6221_v59  ;;  %v2677_v4 = vpop.f32.mrb[29].mxu0 }
 0xa23   : > { %v2686_v37 = vmul.f32 %v2677_v4, %v6223_v29 }
 0xa24   : > { %v2689_v43 = vadd.f32 %v2687_v20, %v2604_v19 }
 0xa25   : > { %v2688_v40 = vadd.f32 %v2686_v37, %v2603_v5  ;;  %v2905_v5 = vmul.f32 %v6165_v7, %v6219_v54 }
 0xa27   : > { %v2691_v41 = vpack.c.bf16 %v2689_v43, %v2688_v40  ;;  %v2904_v40 = vmul.f32 %v6169_v8, %v6460_v44 }
 0xa29   : > { %4153 = vmatmul.mubr.msk.bf16.vlgmr.msra.gmra.mrb[28].mxu1 %vm1043_vm1, %v2691_v41 }
 0xa2a   : > { %4442 = vmatpush3.bf16.msra.mxu1 %v5923_v12  ;;  %4172 = vmatprep.mubr.msk.f32.mxu1 %vm1043_vm1, %v2749_v45 }
 0xa2b   : > { %4444 = vmatprep.subr.bf16.mxu1 %v5925_v15 }
 0xa2e   : > { %4446 = vmatpush3.bf16.msra.mxu1 %v5925_v15 }
 0xa2f   : > { %4448 = vmatprep.subr.bf16.mxu1 %v5932_v18 }
 0xa32   : > { %4450 = vmatpush3.bf16.msra.mxu1 %v5932_v18 }
 0xa33   : > { %4452 = vmatprep.subr.bf16.mxu1 %v5943_v21 }
 0xa36   : > { %4454 = vmatpush3.bf16.msra.mxu1 %v5943_v21 }
 0xa37   : > { %4200 = vmatprep.subr.bf16.mxu1 %v5314_v24 }
 0xa39   : > { %4173 = vmatmul.mubr.msk.f32.vlgmr.msra.gmra.mrb[32].mxu1 %vm1043_vm1, %v2751_v26 }
 0xa3a   : > { %4202 = vmatprep.mubr.msk.bf16.mxu1 %vm5315_vm2, %v5314_v24 }
 0xafc   : > { %v2732_v53 = vpop.f32.mrb[28].mxu1 }
 0xafd   : > { %v2739_v61 = vmul.f32 %v6250_v32, %v2732_v53  ;;  %v4154_v14 = vpop.f32.mrb[29].mxu1 }
 0xafe   : > { %v2735_v55 = vpop.f32.mrb[30].mxu1 }
 0xaff   : > { %v2741_v38 = vadd.f32 %v6246_v28, %v2739_v61  ;;  %v2740_v35 = vmul.f32 %v6250_v32, %v2735_v55  ;;  %v4155_v3 = vpop.f32.mrb[31].mxu1 }
 0xb01   : > { %3678 = vst.msk [vmem:[%s6357_s8 + $0x20] sm:$0xff] %vm2132_vm3, %v2741_v38  ;;  %v2742_v31 = vadd.f32 %v6246_v28, %v2740_v35 }
 0xb03   : > { %3679 = vst.msk [vmem:[%s6357_s8 + $0x28] sm:$0xff] %vm2132_vm3, %v2742_v31 }
 0xb0c   : > { %v4174_v6 = vpop.f32.mrb[32].mxu1 }
 0xb0d   : > { %v2832_v13 = vmul.f32 %v4174_v6, %v6221_v59  ;;  %v2822_v50 = vpop.f32.mrb[33].mxu1 }
 0xb0e   : > { %v2831_v60 = vmul.f32 %v2822_v50, %v6223_v29 }
 0xb0f   : > { %2837 = vrot.lane.b32.xlu1 %v2832_v13, %s5313_s27  ;;  %v3048_v13 = vmul.f32 %v6283_v27, %v6219_v54 }
 0xb10   : > { %2835 = vrot.lane.b32.xlu0 %v2831_v60, %s5313_s27 }
 0xb14   : > { %2849 = vrot.lane.b32.xlu0 %v1796_v52, %s5313_s27 }
 0xb18   : > { %1778 = vrot.lane.b32.xlu0 %v1774_v62, %s5313_s27 }
 0xb1c   : > { %3049 = vrot.lane.b32.xlu0 %v6460_v44, %s5313_s27 }
 0xb81   : > { %v2838_v46 = vpop.permute.xlu1 %2837 }
 0xb82   : > { %v2842_v52 = vadd.f32 %v2838_v46, %v2747_v23  ;;  %v2836_v36 = vpop.permute.xlu0 %2835 }
 0xb83   : > { %v2841_v0 = vadd.f32 %v2836_v36, %v2746_v34 }
 0xb85   : > { %v2844_v2 = vpack.c.bf16 %v2842_v52, %v2841_v0 }
 0xb86   : > { %v2850_v17 = vpop.permute.xlu0 %2849 }
 0xb87   : > { %v2855_v39 = vsel %vm1043_vm1, %v2850_v17, 0  ;;  %2846 = vrot.lane.b32.xlu1 %v2844_v2, %s5313_s27 }
 0xb88   : > { %4176 = vmatpush3.bf16.xpose.msra.mxu0 %v2855_v39 }
 0xb89   : > { %4456 = vmatprep.subr.bf16.mxu0 %v5923_v12 }
 0xb8a   : > { %v1779_v9 = vpop.permute.xlu0 %1778 }
 0xb8b   : > { %1780 = vrot.lane.b32.xlu1 %v1775_v51, %s5313_s27  ;;  %v1784_v1 = vadd.f32 %v1779_v9, %v1689_v11 }
 0xb8d   : > { %v1792_v47 = vsel %vm1043_vm1, %v6134_v58, %v1784_v1 }
 0xb8e   : > { %v3050_v61 = vpop.permute.xlu0 %3049 }
 0xb8f   : > { %3051 = vrot.lane.b32.xlu1 %v6219_v54, %s5313_s27 }
 0xbf9   : > { %v2847_v10 = vpop.permute.xlu1 %2846 }
 0xbfa   : > { %4178 = vmatmul.mubr.msk.bf16.vlgmr.msra.gmra.mrb[32].mxu0 %vm1043_vm1, %v2847_v10 }
 0xbfb   : > { %4458 = vmatpush3.bf16.msra.mxu0 %v5923_v12  ;;  %4197 = vmatprep.mubr.msk.f32.mxu0 %vm1043_vm1, %v6460_v44 }
 0xbfc   : > { %4460 = vmatprep.subr.bf16.mxu0 %v5925_v15 }
 0xbfd   : > { %v1781_v56 = vpop.permute.xlu1 %1780 }
 0xbfe   : > { %v1785_v49 = vadd.f32 %v1781_v56, %v1690_v16 }
 0xbff   : > { %4462 = vmatpush3.bf16.msra.mxu0 %v5925_v15 }
 0xc00   : > { %v1793_v25 = vsel %vm1043_vm1, %v6132_v57, %v1785_v49  ;;  %4464 = vmatprep.subr.bf16.mxu0 %v5932_v18 }
 0xc01   : > { %v1797_v33 = vpack.c.bf16 %v1793_v25, %v1792_v47  ;;  %v3052_v7 = vpop.permute.xlu1 %3051 }
 0xc03   : > { %4466 = vmatpush3.bf16.msra.mxu0 %v5932_v18  ;;  %v2997_v48 = vsel %vm1043_vm1, %v1797_v33, 0 }
 0xc04   : > { %4201 = vmatpush3.bf16.xpose.msra.mxu1 %v2997_v48  ;;  %4468 = vmatprep.subr.bf16.mxu0 %v5943_v21 }
 0xc05   : > { %4472 = vmatprep.subr.bf16.mxu1 %v5923_v12 }
 0xc07   : > { %4470 = vmatpush3.bf16.msra.mxu0 %v5943_v21 }
 0xc08   : > { %4225 = vmatprep.subr.bf16.mxu0 %v5314_v24 }
 0xc0a   : > { %4198 = vmatmul.mubr.msk.f32.vlgmr.msra.gmra.mrb[30].mxu0 %vm1043_vm1, %v6219_v54 }
 0xc0b   : > { %4227 = vmatprep.mubr.msk.bf16.mxu0 %vm5315_vm2, %v5314_v24 }
 0xccd   : > { %v2891_v57 = vpop.f32.mrb[32].mxu0 }
 0xcce   : > { %v2898_v58 = vmul.f32 %v6250_v32, %v2891_v57  ;;  %v4179_v22 = vpop.f32.mrb[33].mxu0 }
 0xccf   : > { %v2894_v63 = vpop.f32.mrb[34].mxu0 }
 0xcd0   : > { %v2900_v42 = vadd.f32 %v6246_v28, %v2898_v58  ;;  %v2899_v19 = vmul.f32 %v6250_v32, %v2894_v63  ;;  %v4180_v20 = vpop.f32.mrb[35].mxu0 }
 0xcd2   : > { %2902 = vst.msk [vmem:[%s6506_s23] sm:$0xff] %vm2132_vm3, %v2900_v42  ;;  %v2901_v4 = vadd.f32 %v6246_v28, %v2899_v19 }
 0xcd4   : > { %2903 = vst.msk [vmem:[%s6506_s23 + $0x8] sm:$0xff] %vm2132_vm3, %v2901_v4 }
 0xcdd   : > { %v4199_v24 = vpop.f32.mrb[30].mxu0 }
 0xcde   : > { %v2988_v37 = vmul.f32 %v4199_v24, %v6221_v59  ;;  %v2978_v43 = vpop.f32.mrb[31].mxu0 }
 0xcdf   : > { %v2987_v41 = vmul.f32 %v2978_v43, %v6223_v29 }
 0xce0   : > { %v2990_v45 = vadd.f32 %v2988_v37, %v2905_v5 }
 0xce1   : > { %v2989_v26 = vadd.f32 %v2987_v41, %v2904_v40 }
 0xce3   : > { %v2992_v53 = vpack.c.bf16 %v2990_v45, %v2989_v26 }
 0xce5   : > { %4203 = vmatmul.mubr.msk.bf16.vlgmr.msra.gmra.mrb[36].mxu1 %vm1043_vm1, %v2992_v53 }
 0xce6   : > { %4474 = vmatpush3.bf16.msra.mxu1 %v5923_v12  ;;  %4222 = vmatprep.mubr.msk.f32.mxu1 %vm1043_vm1, %v3050_v61 }
 0xce7   : > { %4476 = vmatprep.subr.bf16.mxu1 %v5925_v15 }
 0xcea   : > { %4478 = vmatpush3.bf16.msra.mxu1 %v5925_v15 }
 0xceb   : > { %4480 = vmatprep.subr.bf16.mxu1 %v5932_v18 }
 0xcee   : > { %4482 = vmatpush3.bf16.msra.mxu1 %v5932_v18 }
 0xcef   : > { %4484 = vmatprep.subr.bf16.mxu1 %v5943_v21 }
 0xcf2   : > { %4486 = vmatpush3.bf16.msra.mxu1 %v5943_v21 }
 0xcf5   : > { %4223 = vmatmul.mubr.msk.f32.vlgmr.msra.gmra.mrb[34].mxu1 %vm1043_vm1, %v3052_v7 }
 0xdb8   : > { %v3033_v12 = vpop.f32.mrb[36].mxu1 }
 0xdb9   : > { %v3040_v8 = vmul.f32 %v6250_v32, %v3033_v12  ;;  %v4204_v14 = vpop.f32.mrb[37].mxu1 }
 0xdba   : > { %v3036_v55 = vpop.f32.mrb[38].mxu1 }
 0xdbb   : > { %v3042_v38 = vadd.f32 %v6246_v28, %v3040_v8  ;;  %v3041_v15 = vmul.f32 %v6250_v32, %v3036_v55  ;;  %v4205_v35 = vpop.f32.mrb[39].mxu1 }
 0xdbd   : > { %3686 = vst.msk [vmem:[%s6506_s23 + $0x10] sm:$0xff] %vm2132_vm3, %v3042_v38  ;;  %v3043_v18 = vadd.f32 %v6246_v28, %v3041_v15 }
 0xdbf   : > { %3687 = vst.msk [vmem:[%s6506_s23 + $0x18] sm:$0xff] %vm2132_vm3, %v3043_v18 }
 0xdc8   : > { %v4224_v21 = vpop.f32.mrb[34].mxu1 }
 0xdc9   : > { %v3133_v3 = vmul.f32 %v4224_v21, %v6221_v59  ;;  %v3123_v31 = vpop.f32.mrb[35].mxu1  ;;  %v3047_v59 = vmul.f32 %v6285_v30, %v6460_v44 }
 0xdca   : > { %v3132_v6 = vmul.f32 %v3123_v31, %v6223_v29 }
 0xdcb   : > { %3138 = vrot.lane.b32.xlu1 %v3133_v3, %s5313_s27 }
 0xdcc   : > { %3136 = vrot.lane.b32.xlu0 %v3132_v6, %s5313_s27 }
 0xdd0   : > { %3150 = vrot.lane.b32.xlu0 %v1797_v33, %s5313_s27 }
 0xe3d   : > { %v3139_v50 = vpop.permute.xlu1 %3138 }
 0xe3e   : > { %v3143_v60 = vadd.f32 %v3139_v50, %v3048_v13  ;;  %v3137_v29 = vpop.permute.xlu0 %3136 }
 0xe3f   : > { %v3142_v62 = vadd.f32 %v3137_v29, %v3047_v59 }
 0xe41   : > { %v3145_v23 = vpack.c.bf16 %v3143_v60, %v3142_v62 }
 0xe42   : > { %v3151_v46 = vpop.permute.xlu0 %3150 }
 0xe43   : > { %v3156_v34 = vsel %vm1043_vm1, %v3151_v46, 0  ;;  %3147 = vrot.lane.b32.xlu1 %v3145_v23, %s5313_s27 }
 0xe44   : > { %4226 = vmatpush3.bf16.xpose.msra.mxu0 %v3156_v34 }
 0xeb5   : > { %v3148_v52 = vpop.permute.xlu1 %3147 }
 0xeb6   : > { %4228 = vmatmul.mubr.msk.bf16.vlgmr.msra.gmra.mrb[36].mxu0 %vm1043_vm1, %v3148_v52 }
 0xeb7   : > { %5129 = shalt.err (!%p5126_p11)
}
 0xeb8   : > { %s5130_s28 = scalar_lea.hbm %s6559_s4, 768  ;;  %s5134_s5 = scalar_lea.hbm %s6816_s0, 1536 }
 0xeb9   : > { %p5131_p9 = scmp.ne.s32.totalorder %s6559_s4, %s5130_s28  ;;  %p5135_p3 = scmp.lt.u32.totalorder %s6559_s4, %s6816_s0 }
 0xeba   : > { %p5136_p4 = scmp.lt.u32.totalorder %s5134_s5, %s5130_s28  ;;  %p5138_p13 = scmp.lt.u32.totalorder %s5130_s28, %s6559_s4 }
 0xebb   : > { %p5132_p10 = pnand %p5131_p9, %p6817_p6 }
 0xebc   : > { %p5137_p7 = por %p5136_p4, %p5135_p3 }
 0xebd   : > { %p5133_p0 = pneg %p5132_p10 }
 0xebe   : > { %p5139_p2 = por %p5138_p13, %p5137_p7 }
 0xec0   : > { %p5140_p8 = pnand %p5139_p2, %p5133_p0 }
 0xec2   : > { %5143 = shalt.err (!%p5140_p8)
}
 0xec3   : > { %s5317_s21 = smov 128   ;;  %s5318_s20 = smov 8  }
 0xec4   : > { %4539 = dma.vmem_to_hbm [thread:$0]  (%p6817_p6), %s6552_s30, 768, %s6559_s4, %s3212_s3, %s5317_s21, %s5317_s21, %s5318_s20  }
 0xec5   : > { %s3702_s18 = sshll.u32 %s6815_s11, 9  ;;  %s6818_s28 = sld [smem:[#allocation61_spill]] }
 0xec6   : > { %s3207_s10 = scalar_lea.sflag [#allocation5], %s5869_s29  ;;  %s5144_s5 = scalar_lea.vmem %s6590_s24, 512 }
 0xec7   : > { %p5145_p12 = scmp.ne.s32.totalorder %s6590_s24, %s5144_s5  ;;  %s5319_s8 = smov [#allocation26]  }
 0xec8   : > { %s5148_s30 = sshll.u32 %s5319_s8, 4  ;;  %s5149_s30 = int_to_ptr.vmem [resolvable:$false] %s5148_s30 }
 0xec9   : > { %p5146_p5 = pnand %p5145_p12, %p6817_p6  ;;  %s5150_s9 = scalar_lea.vmem %s5149_s30, 1024 }
 0xeca   : > { %p5151_p11 = scmp.lt.s32.totalorder %s6590_s24, %s5149_s30  ;;  %p5152_p9 = scmp.lt.s32.totalorder %s5150_s9, %s5144_s5 }
 0xecb   : > { %s6596_s27 = scalar_lea.hbm %s6818_s28, %s3702_s18  ;;  %p5147_p1 = pneg %p5146_p5 }
 0xecc   : > { %p5153_p10 = por %p5152_p9, %p5151_p11 }
 0xece   : > { %p5154_p0 = pnand %p5153_p10, %p5147_p1 }
 0xed0   : > { %5157 = shalt.err (!%p5154_p0)
}
 0xed1   : > { %s5158_s4 = scalar_lea.hbm %s6596_s27, 512  ;;  %s5162_s1 = scalar_lea.hbm %s6818_s28, 1024 }
 0xed2   : > { %p5159_p3 = scmp.ne.s32.totalorder %s6596_s27, %s5158_s4  ;;  %p5163_p13 = scmp.lt.u32.totalorder %s6596_s27, %s6818_s28 }
 0xed3   : > { %p5164_p2 = scmp.lt.u32.totalorder %s5162_s1, %s5158_s4  ;;  %p5166_p12 = scmp.lt.u32.totalorder %s5158_s4, %s6596_s27 }
 0xed4   : > { %p5160_p4 = pnand %p5159_p3, %p6817_p6 }
 0xed5   : > { %p5165_p8 = por %p5164_p2, %p5163_p13 }
 0xed6   : > { %p5161_p7 = pneg %p5160_p4 }
 0xed7   : > { %p5167_p5 = por %p5166_p12, %p5165_p8 }
 0xed9   : > { %p5168_p1 = pnand %p5167_p5, %p5161_p7 }
 0xedb   : > { %5171 = shalt.err (!%p5168_p1)
}
 0xedc   : > { %4538 = dma.vmem_to_hbm [thread:$0]  (%p6817_p6), %s6590_s24, 512, %s6596_s27, %s3207_s10, %s5317_s21, %s5317_s21, %s5318_s20  }
 0xedd   : > { %s3268_s5 = sshll.u32 %s6506_s23, 4  ;;  %s6819_s27 = sld [smem:[#allocation63_spill]]  ;;  %s6629_s5 = int_to_ptr.vmem [resolvable:$true] %s3268_s5 }
 0xede   : > { %s5172_s30 = scalar_lea.vmem %s6629_s5, 768  ;;  %s5320_s9 = smov [#allocation29]  }
 0xedf   : > { %p5173_p11 = scmp.ne.s32.totalorder %s6629_s5, %s5172_s30  ;;  %s5176_s4 = sshll.u32 %s5320_s9, 4  ;;  %s5177_s4 = int_to_ptr.vmem [resolvable:$false] %s5176_s4 }
 0xee0   : > { %s5178_s6 = scalar_lea.vmem %s5177_s4, 1536  ;;  %p5179_p0 = scmp.lt.s32.totalorder %s6629_s5, %s5177_s4 }
 0xee1   : > { %p5174_p9 = pnand %p5173_p11, %p6817_p6  ;;  %p5180_p3 = scmp.lt.s32.totalorder %s5178_s6, %s5172_s30 }
 0xee3   : > { %s6639_s10 = scalar_lea.hbm %s6819_s27, %s4488_s13  ;;  %p5175_p10 = pneg %p5174_p9 }
 0xee4   : > { %p5181_p4 = por %p5180_p3, %p5179_p0 }
 0xee6   : > { %p5182_p7 = pnand %p5181_p4, %p5175_p10 }
 0xf89   : > { %v3192_v54 = vpop.f32.mrb[36].mxu0 }
 0xf8a   : > { %v3199_v27 = vmul.f32 %v6250_v32, %v3192_v54  ;;  %v4229_v30 = vpop.f32.mrb[37].mxu0 }
 0xf8b   : > { %v3195_v44 = vpop.f32.mrb[38].mxu0 }
 0xf8c   : > { %v3201_v36 = vadd.f32 %v6246_v28, %v3199_v27  ;;  %v3200_v0 = vmul.f32 %v6250_v32, %v3195_v44  ;;  %v4230_v2 = vpop.f32.mrb[39].mxu0 }
 0xf8e   : > { %3691 = vst.msk [vmem:[%s6506_s23 + $0x20] sm:$0xff] %vm2132_vm3, %v3201_v36  ;;  %v3202_v17 = vadd.f32 %v6246_v28, %v3200_v0 }
 0xf90   : > { %3692 = vst.msk [vmem:[%s6506_s23 + $0x28] sm:$0xff] %vm2132_vm3, %v3202_v17 }
 0xf91   : > { %5185 = shalt.err (!%p5182_p7)
}
 0xf92   : > { %s5186_s23 = scalar_lea.hbm %s6639_s10, 768  ;;  %s5190_s18 = scalar_lea.hbm %s6819_s27, 1536 }
 0xf93   : > { %p5187_p13 = scmp.ne.s32.totalorder %s6639_s10, %s5186_s23  ;;  %p5191_p12 = scmp.lt.u32.totalorder %s6639_s10, %s6819_s27 }
 0xf94   : > { %p5192_p5 = scmp.lt.u32.totalorder %s5190_s18, %s5186_s23  ;;  %p5194_p11 = scmp.lt.u32.totalorder %s5186_s23, %s6639_s10 }
 0xf95   : > { %p5188_p2 = pnand %p5187_p13, %p6817_p6 }
 0xf96   : > { %p5193_p1 = por %p5192_p5, %p5191_p12 }
 0xf97   : > { %p5189_p8 = pneg %p5188_p2 }
 0xf98   : > { %p5195_p9 = por %p5194_p11, %p5193_p1 }
 0xf9a   : > { %p5196_p10 = pnand %p5195_p9, %p5189_p8 }
 0xf9c   : > { %5199 = shalt.err (!%p5196_p10)
}
 0xf9d   : > { %4540 = dma.vmem_to_hbm [thread:$0]  (%p6817_p6), %s6629_s5, 768, %s6639_s10, %s3212_s3, %s5317_s21, %s5317_s21, %s5318_s20  }
 0xf9e PF: > { %s6820_s8 = sld [smem:[#allocation41_spill]]  ;;  %s6821_s29 = sld [smem:[#allocation47_spill]] }
 0xf9f   : > { %p6823_p3 = scmp.ge.s32.totalorder %s5290_s26, 2 }
 0xfa4   : > { %s3283_s24 = sand.u32 1, %s6820_s8   ;;  %p6822_p0 = scmp.ne.s32.totalorder %s6821_s29, 0 }
 0xfa5   : > { %s3284_s30 = scalar_lea.sflag [#allocation5], %s3283_s24 }
 0xfa6   : > { %p4589_p4 = pnand %p6823_p3, %p6822_p0 }
 0xfa8   : > { %5261 = dma.done.wait (!%p4589_p4), %s3284_s30, 512  }
 0xfa9   : > { %5263 = vsyncadd (!%p4589_p4), %s3284_s30, 4294966784  ;;  %s6824_s17 = sadd.s32 4294967294, %s5290_s26  }
 0xfaa   : > { %s3292_s9 = sand.u32 1, %s6824_s17  }
 0xfab   : > { %s3293_s4 = scalar_lea.sflag [#allocation28], %s3292_s9 }
 0xfac   : > { %5265 = dma.done.wait (!%p4589_p4), %s3293_s4, 1536  }
 0xfad   : > { %5267 = vsyncadd (!%p4589_p4), %s3293_s4, 4294965760  ;;  %s47_s26 = sadd.s32 1, %s5290_s26   ;;  %s6825_s2 = sld [smem:[#allocation42_spill]] }
 0xfae   : > { %p44_p6 = scmp.ge.s32.totalorder %s47_s26, 4   ;;  %s6826_s23 = sld [smem:[#allocation46_spill]] }
 0xfaf   : > { %s6827_s3 = sld [smem:[#allocation45_spill]]  ;;  %s6828_s21 = smov %s5274_s22 }
 0xfb0   : > { %s6830_s24 = smov %s5286_s25  ;;  %46 = sbr.rel (!%p44_p6) target bundleno = 34 (0x22), region = 242 }
 0xfb3   : > { %s6829_s22 = smov %s6825_s2 }
 0xfb5   : > { %s6831_s25 = smov %s6827_s3 }
 0xfb7   :  { %3307 = vsyncpa [#allocation4], 1 }
 0xfb8   :  { %3309 = vsyncpa [#allocation4 + $0x1], 1 }
 0xfb9   :  { %3310 = vsyncpa [#allocation7], 1 }
 0xfba   :  { %3312 = vsyncpa [#allocation7 + $0x1], 1 }
 0xfbb   :  { %3313 = vsyncpa [#allocation10], 1 }
 0xfbc   :  { %3314 = vsyncpa [#allocation13], 1 }
 0xfbd   :  { %3315 = vsyncpa [#allocation16], 1 }
 0xfbe   :  { %3316 = vsyncpa [#allocation19], 1 }
 0xfbf   :  { %3317 = vsyncpa [#allocation22], 1 }
 0xfc0   :  { %3319 = vsyncpa [#allocation22 + $0x1], 1 }
 0xfc1   :  { %3320 = vsyncpa [#allocation25], 1 }
 0xfc2   :  { %3321 = vsyncpa [#allocation5], 1 }
 0xfc3   :  { %3323 = vsyncpa [#allocation5 + $0x1], 1 }
 0xfc4   :  { %3324 = vsyncpa [#allocation28], 1 }
 0xfc5   :  { %3326 = vsyncpa [#allocation28 + $0x1], 1 }

</bundles_post_ra>
